<compile_context>
chip_gen: v7x
topology: tpu7x:2x2x1
jax: 0.10.0
libtpu: 0.0.40
codegen_flags: <defaults>
</compile_context>

<pallas_src>
import jax
import jax.numpy as jnp
from jax.experimental import pallas as pl
from jax.experimental.pallas import tpu as pltpu


_CHAIN_DIMS = {
    "chain1": [(216, 256), (256, 256), (256, 256), (256, 216)],
    "chain2": [(76, 256), (256, 256), (256, 256), (256, 76)],
    "chain3": [(64, 256), (256, 256), (256, 256), (256, 64)],
}
_CHAIN_NAMES = ("chain1", "chain2", "chain3")
_TRUE_OUT = {"chain1": 216, "chain2": 76, "chain3": 64}


def _round_up(x, m):
    return ((x + m - 1) // m) * m


def _networks_kernel(*refs):
    """Fused forward of the 3 chains; all weights resident in VMEM.

    refs = (x1, x2, x3,
            c1_w1, c1_b1, ..., c1_w4, c1_b4,
            c2_w1, ..., c2_b4,
            c3_w1, ..., c3_b4,
            o1, o2, o3)
    """
    x_refs = refs[0:3]
    param_refs = refs[3:27]
    out_refs = refs[27:30]

    for c in range(3):
        # Activations enter the MXU as bf16; accumulation is f32.
        h = x_refs[c][...].astype(jnp.bfloat16)
        layers = param_refs[8 * c: 8 * (c + 1)]
        n_layers = 4
        for l in range(n_layers):
            w = layers[2 * l][...]        # bf16 [d_in, d_out] (resident)
            b = layers[2 * l + 1][...]    # f32  [1, d_out]
            acc = jnp.dot(h, w, preferred_element_type=jnp.float32)
            # Bias + ReLU on the f32 accumulator (v5e VPU has no bf16 path).
            acc = jnp.maximum(acc + b, 0.0)
            h = acc.astype(jnp.bfloat16) if l < n_layers - 1 else acc
        out_refs[c][...] = h.astype(out_refs[c].dtype)


def networks_forward(params, input1, input2, input3, *, tm_max=512):
    """Pallas equivalent of Networks.forward (single fused launch)."""
    inputs = (input1, input2, input3)
    n = input1.shape[0]
    assert input2.shape[0] == n and input3.shape[0] == n

    # Batch tile: multiple of 8 sublanes, capped at tm_max (f32 pipelining
    # sweet spot), VMEM-safe on v7x's smaller budget.
    tm = min(tm_max, _round_up(n, 8))
    grid = (pl.cdiv(n, tm),)

    in_specs = []
    flat_params = []

    # Inputs: batch-tiled, full feature width (lane dim == full array dim).
    for x in inputs:
        d_in = x.shape[1]
        in_specs.append(pl.BlockSpec((tm, d_in), lambda i: (i, 0)))

    # Params: full-array blocks, constant index_map -> resident across grid.
    for name in _CHAIN_NAMES:
        for (w, b) in params[name]:
            flat_params.append(w)
            flat_params.append(b)
            in_specs.append(pl.BlockSpec(w.shape, lambda i: (0, 0)))
            in_specs.append(pl.BlockSpec(b.shape, lambda i: (0, 0)))

    # Outputs: batch-tiled, lane-padded widths (multiple of 128).
    out_specs = []
    out_shapes = []
    true_out_dims = []
    for name in _CHAIN_NAMES:
        d_out_pad = params[name][-1][0].shape[1]
        true_out_dims.append(_TRUE_OUT[name])
        out_specs.append(pl.BlockSpec((tm, d_out_pad), lambda i: (i, 0)))
        out_shapes.append(jax.ShapeDtypeStruct((n, d_out_pad), jnp.float32))

    outs = pl.pallas_call(
        _networks_kernel,
        grid=grid,
        in_specs=in_specs,
        out_specs=tuple(out_specs),
        out_shape=tuple(out_shapes),
        compiler_params=pltpu.CompilerParams(
            dimension_semantics=("parallel",),   # megacore batch split on v7x
            vmem_limit_bytes=32 * 1024 * 1024,
        ),
    )(input1, input2, input3, *flat_params)

    # Strip the lane padding back to the module's true output widths.
    return tuple(o[:, :d] for o, d in zip(outs, true_out_dims))


def init_linear_params(key, in_features, out_features, out_features_padded=None):
    """torch.nn.Linear-style init (uniform +-1/sqrt(in)).

    Returns W [in, out_padded] in bf16 (transposed for x @ W) and b
    [1, out_padded] in f32; padded columns are zero (ReLU(0)=0, sliced away).
    """
    kw, kb = jax.random.split(key)
    bound = 1.0 / jnp.sqrt(jnp.float32(in_features))
    w = jax.random.uniform(kw, (in_features, out_features), jnp.float32,
                           minval=-bound, maxval=bound)
    b = jax.random.uniform(kb, (1, out_features), jnp.float32,
                           minval=-bound, maxval=bound)
    if out_features_padded is not None and out_features_padded > out_features:
        pad = out_features_padded - out_features
        w = jnp.pad(w, ((0, 0), (0, pad)))
        b = jnp.pad(b, ((0, 0), (0, pad)))
    return w.astype(jnp.bfloat16), b.astype(jnp.float32)


def build_networks_params(key):
    """Build the 12 Linear layers used by Networks.forward."""
    params = {}
    keys = jax.random.split(key, 12)
    idx = 0
    for name, layer_dims in _CHAIN_DIMS.items():
        layers = []
        for li, (din, dout) in enumerate(layer_dims):
            dpad = _round_up(dout, 128) if li == len(layer_dims) - 1 else dout
            layers.append(init_linear_params(keys[idx], din, dout, dpad))
            idx += 1
        params[name] = layers
    return params
    # TODO(synk): self.weight/weight1/weight2/weight3 (2000x2000), the
    # ConvTranspose2d `fusion` head and SE_block are only used in forward2/
    # forward3 (SE_block is not even defined in the provided file), so they
    # are not materialized here.


def _reference_forward(params, input1, input2, input3):
    """Plain-JAX reference mirroring the kernel's bf16/f32 numerics."""
    def chain(x, layers, true_out):
        h = x.astype(jnp.bfloat16)
        for li, (w, b) in enumerate(layers):
            acc = jnp.dot(h, w, preferred_element_type=jnp.float32)
            acc = jnp.maximum(acc + b, 0.0)
            h = acc.astype(jnp.bfloat16) if li < len(layers) - 1 else acc
        return h[:, :true_out]
    return (chain(input1, params["chain1"], 216),
            chain(input2, params["chain2"], 76),
            chain(input3, params["chain3"], 64))


if __name__ == "__main__":
    key = jax.random.PRNGKey(0)
    k_params, k1, k2, k3 = jax.random.split(key, 4)

    params = build_networks_params(k_params)

    batch = 8
    input1 = jax.random.normal(k1, (batch, 216), jnp.float32)
    input2 = jax.random.normal(k2, (batch, 76), jnp.float32)
    input3 = jax.random.normal(k3, (batch, 64), jnp.float32)

    out1, out2, out3 = networks_forward(params, input1, input2, input3)
    jax.block_until_ready((out1, out2, out3))

    assert out1.shape == (batch, 216)
    assert out2.shape == (batch, 76)
    assert out3.shape == (batch, 64)

    # Correctness check against a plain-JAX reference with identical numerics.
    ref1, ref2, ref3 = _reference_forward(params, input1, input2, input3)
    for o, r in ((out1, ref1), (out2, ref2), (out3, ref3)):
        assert jnp.allclose(o, r, atol=1e-2, rtol=1e-2), "mismatch vs reference"

    print("KERNEL_OK")
</pallas_src>

<mosaic_0001>
module attributes {stable_mosaic.version = 11 : i64} {
  func.func @_networks_kernel(%arg0: i32, %arg1: memref<8x216xf32, #tpu.memory_space<vmem>>, %arg2: memref<8x76xf32, #tpu.memory_space<vmem>>, %arg3: memref<8x64xf32, #tpu.memory_space<vmem>>, %arg4: memref<216x256xbf16, #tpu.memory_space<vmem>>, %arg5: memref<1x256xf32, #tpu.memory_space<vmem>>, %arg6: memref<256x256xbf16, #tpu.memory_space<vmem>>, %arg7: memref<1x256xf32, #tpu.memory_space<vmem>>, %arg8: memref<256x256xbf16, #tpu.memory_space<vmem>>, %arg9: memref<1x256xf32, #tpu.memory_space<vmem>>, %arg10: memref<256x256xbf16, #tpu.memory_space<vmem>>, %arg11: memref<1x256xf32, #tpu.memory_space<vmem>>, %arg12: memref<76x256xbf16, #tpu.memory_space<vmem>>, %arg13: memref<1x256xf32, #tpu.memory_space<vmem>>, %arg14: memref<256x256xbf16, #tpu.memory_space<vmem>>, %arg15: memref<1x256xf32, #tpu.memory_space<vmem>>, %arg16: memref<256x256xbf16, #tpu.memory_space<vmem>>, %arg17: memref<1x256xf32, #tpu.memory_space<vmem>>, %arg18: memref<256x128xbf16, #tpu.memory_space<vmem>>, %arg19: memref<1x128xf32, #tpu.memory_space<vmem>>, %arg20: memref<64x256xbf16, #tpu.memory_space<vmem>>, %arg21: memref<1x256xf32, #tpu.memory_space<vmem>>, %arg22: memref<256x256xbf16, #tpu.memory_space<vmem>>, %arg23: memref<1x256xf32, #tpu.memory_space<vmem>>, %arg24: memref<256x256xbf16, #tpu.memory_space<vmem>>, %arg25: memref<1x256xf32, #tpu.memory_space<vmem>>, %arg26: memref<256x128xbf16, #tpu.memory_space<vmem>>, %arg27: memref<1x128xf32, #tpu.memory_space<vmem>>, %arg28: memref<8x256xf32, #tpu.memory_space<vmem>>, %arg29: memref<8x128xf32, #tpu.memory_space<vmem>>, %arg30: memref<8x128xf32, #tpu.memory_space<vmem>>) attributes {dimension_semantics = [#tpu.dimension_semantics<parallel>], iteration_bounds = array<i64: 1>, scalar_prefetch = 0 : i64, scratch_operands = 0 : i64, tpu.core_type = #tpu.core_type<tc>, window_params = [{transform_indices = @transform_0, window_bounds = array<i64: 8, 216>}, {transform_indices = @transform_1, window_bounds = array<i64: 8, 76>}, {transform_indices = @transform_2, window_bounds = array<i64: 8, 64>}, {pipeline_mode = #tpu.pipeline_mode<synchronous>, transform_indices = @transform_3, window_bounds = array<i64: 216, 256>}, {pipeline_mode = #tpu.pipeline_mode<synchronous>, transform_indices = @transform_4, window_bounds = array<i64: 1, 256>}, {pipeline_mode = #tpu.pipeline_mode<synchronous>, transform_indices = @transform_5, window_bounds = array<i64: 256, 256>}, {pipeline_mode = #tpu.pipeline_mode<synchronous>, transform_indices = @transform_6, window_bounds = array<i64: 1, 256>}, {pipeline_mode = #tpu.pipeline_mode<synchronous>, transform_indices = @transform_7, window_bounds = array<i64: 256, 256>}, {pipeline_mode = #tpu.pipeline_mode<synchronous>, transform_indices = @transform_8, window_bounds = array<i64: 1, 256>}, {pipeline_mode = #tpu.pipeline_mode<synchronous>, transform_indices = @transform_9, window_bounds = array<i64: 256, 256>}, {pipeline_mode = #tpu.pipeline_mode<synchronous>, transform_indices = @transform_10, window_bounds = array<i64: 1, 256>}, {pipeline_mode = #tpu.pipeline_mode<synchronous>, transform_indices = @transform_11, window_bounds = array<i64: 76, 256>}, {pipeline_mode = #tpu.pipeline_mode<synchronous>, transform_indices = @transform_12, window_bounds = array<i64: 1, 256>}, {pipeline_mode = #tpu.pipeline_mode<synchronous>, transform_indices = @transform_13, window_bounds = array<i64: 256, 256>}, {pipeline_mode = #tpu.pipeline_mode<synchronous>, transform_indices = @transform_14, window_bounds = array<i64: 1, 256>}, {pipeline_mode = #tpu.pipeline_mode<synchronous>, transform_indices = @transform_15, window_bounds = array<i64: 256, 256>}, {pipeline_mode = #tpu.pipeline_mode<synchronous>, transform_indices = @transform_16, window_bounds = array<i64: 1, 256>}, {pipeline_mode = #tpu.pipeline_mode<synchronous>, transform_indices = @transform_17, window_bounds = array<i64: 256, 128>}, {pipeline_mode = #tpu.pipeline_mode<synchronous>, transform_indices = @transform_18, window_bounds = array<i64: 1, 128>}, {pipeline_mode = #tpu.pipeline_mode<synchronous>, transform_indices = @transform_19, window_bounds = array<i64: 64, 256>}, {pipeline_mode = #tpu.pipeline_mode<synchronous>, transform_indices = @transform_20, window_bounds = array<i64: 1, 256>}, {pipeline_mode = #tpu.pipeline_mode<synchronous>, transform_indices = @transform_21, window_bounds = array<i64: 256, 256>}, {pipeline_mode = #tpu.pipeline_mode<synchronous>, transform_indices = @transform_22, window_bounds = array<i64: 1, 256>}, {pipeline_mode = #tpu.pipeline_mode<synchronous>, transform_indices = @transform_23, window_bounds = array<i64: 256, 256>}, {pipeline_mode = #tpu.pipeline_mode<synchronous>, transform_indices = @transform_24, window_bounds = array<i64: 1, 256>}, {pipeline_mode = #tpu.pipeline_mode<synchronous>, transform_indices = @transform_25, window_bounds = array<i64: 256, 128>}, {pipeline_mode = #tpu.pipeline_mode<synchronous>, transform_indices = @transform_26, window_bounds = array<i64: 1, 128>}, {transform_indices = @transform_27, window_bounds = array<i64: 8, 256>}, {transform_indices = @transform_28, window_bounds = array<i64: 8, 128>}, {transform_indices = @transform_29, window_bounds = array<i64: 8, 128>}]} {
    %c0 = arith.constant 0 : index
    %c0_0 = arith.constant 0 : index
    %0 = vector.load %arg1[%c0, %c0_0] : memref<8x216xf32, #tpu.memory_space<vmem>>, vector<8x216xf32>
    %1 = arith.truncf %0 : vector<8x216xf32> to vector<8x216xbf16>
    %c0_1 = arith.constant 0 : index
    %c0_2 = arith.constant 0 : index
    %2 = vector.load %arg4[%c0_1, %c0_2] : memref<216x256xbf16, #tpu.memory_space<vmem>>, vector<216x256xbf16>
    %c0_3 = arith.constant 0 : index
    %c0_4 = arith.constant 0 : index
    %3 = vector.load %arg5[%c0_3, %c0_4] : memref<1x256xf32, #tpu.memory_space<vmem>>, vector<1x256xf32>
    %cst = arith.constant dense<0.000000e+00> : vector<8x256xf32>
    %4 = tpu.matmul %1, %2, %cst {dimension_numbers = #tpu.dot_dimension_numbers<[1], [0], [0], [1], [0, 0, 1, 1], [], []>} : vector<8x216xbf16>, vector<216x256xbf16>, vector<8x256xf32> -> vector<8x256xf32>
    %5 = vector.broadcast %3 : vector<1x256xf32> to vector<8x256xf32>
    %6 = arith.addf %4, %5 : vector<8x256xf32>
    %cst_5 = arith.constant 0.000000e+00 : f32
    %7 = vector.broadcast %cst_5 : f32 to vector<8x256xf32>
    %8 = arith.maximumf %6, %7 : vector<8x256xf32>
    %9 = arith.truncf %8 : vector<8x256xf32> to vector<8x256xbf16>
    %c0_6 = arith.constant 0 : index
    %c0_7 = arith.constant 0 : index
    %10 = vector.load %arg6[%c0_6, %c0_7] : memref<256x256xbf16, #tpu.memory_space<vmem>>, vector<256x256xbf16>
    %c0_8 = arith.constant 0 : index
    %c0_9 = arith.constant 0 : index
    %11 = vector.load %arg7[%c0_8, %c0_9] : memref<1x256xf32, #tpu.memory_space<vmem>>, vector<1x256xf32>
    %cst_10 = arith.constant dense<0.000000e+00> : vector<8x256xf32>
    %12 = tpu.matmul %9, %10, %cst_10 {dimension_numbers = #tpu.dot_dimension_numbers<[1], [0], [0], [1], [0, 0, 1, 1], [], []>} : vector<8x256xbf16>, vector<256x256xbf16>, vector<8x256xf32> -> vector<8x256xf32>
    %13 = vector.broadcast %11 : vector<1x256xf32> to vector<8x256xf32>
    %14 = arith.addf %12, %13 : vector<8x256xf32>
    %cst_11 = arith.constant 0.000000e+00 : f32
    %15 = vector.broadcast %cst_11 : f32 to vector<8x256xf32>
    %16 = arith.maximumf %14, %15 : vector<8x256xf32>
    %17 = arith.truncf %16 : vector<8x256xf32> to vector<8x256xbf16>
    %c0_12 = arith.constant 0 : index
    %c0_13 = arith.constant 0 : index
    %18 = vector.load %arg8[%c0_12, %c0_13] : memref<256x256xbf16, #tpu.memory_space<vmem>>, vector<256x256xbf16>
    %c0_14 = arith.constant 0 : index
    %c0_15 = arith.constant 0 : index
    %19 = vector.load %arg9[%c0_14, %c0_15] : memref<1x256xf32, #tpu.memory_space<vmem>>, vector<1x256xf32>
    %cst_16 = arith.constant dense<0.000000e+00> : vector<8x256xf32>
    %20 = tpu.matmul %17, %18, %cst_16 {dimension_numbers = #tpu.dot_dimension_numbers<[1], [0], [0], [1], [0, 0, 1, 1], [], []>} : vector<8x256xbf16>, vector<256x256xbf16>, vector<8x256xf32> -> vector<8x256xf32>
    %21 = vector.broadcast %19 : vector<1x256xf32> to vector<8x256xf32>
    %22 = arith.addf %20, %21 : vector<8x256xf32>
    %cst_17 = arith.constant 0.000000e+00 : f32
    %23 = vector.broadcast %cst_17 : f32 to vector<8x256xf32>
    %24 = arith.maximumf %22, %23 : vector<8x256xf32>
    %25 = arith.truncf %24 : vector<8x256xf32> to vector<8x256xbf16>
    %c0_18 = arith.constant 0 : index
    %c0_19 = arith.constant 0 : index
    %26 = vector.load %arg10[%c0_18, %c0_19] : memref<256x256xbf16, #tpu.memory_space<vmem>>, vector<256x256xbf16>
    %c0_20 = arith.constant 0 : index
    %c0_21 = arith.constant 0 : index
    %27 = vector.load %arg11[%c0_20, %c0_21] : memref<1x256xf32, #tpu.memory_space<vmem>>, vector<1x256xf32>
    %cst_22 = arith.constant dense<0.000000e+00> : vector<8x256xf32>
    %28 = tpu.matmul %25, %26, %cst_22 {dimension_numbers = #tpu.dot_dimension_numbers<[1], [0], [0], [1], [0, 0, 1, 1], [], []>} : vector<8x256xbf16>, vector<256x256xbf16>, vector<8x256xf32> -> vector<8x256xf32>
    %29 = vector.broadcast %27 : vector<1x256xf32> to vector<8x256xf32>
    %30 = arith.addf %28, %29 : vector<8x256xf32>
    %cst_23 = arith.constant 0.000000e+00 : f32
    %31 = vector.broadcast %cst_23 : f32 to vector<8x256xf32>
    %32 = arith.maximumf %30, %31 : vector<8x256xf32>
    %c0_24 = arith.constant 0 : index
    %c0_25 = arith.constant 0 : index
    %33 = vector.load %arg28[%c0_24, %c0_25] : memref<8x256xf32, #tpu.memory_space<vmem>>, vector<8x256xf32>
    tpu.vector_store %arg28[%c0_24, %c0_25], %32 {strides = array<i32>} : memref<8x256xf32, #tpu.memory_space<vmem>>, vector<8x256xf32>,
    %c0_26 = arith.constant 0 : index
    %c0_27 = arith.constant 0 : index
    %34 = vector.load %arg2[%c0_26, %c0_27] : memref<8x76xf32, #tpu.memory_space<vmem>>, vector<8x76xf32>
    %35 = arith.truncf %34 : vector<8x76xf32> to vector<8x76xbf16>
    %c0_28 = arith.constant 0 : index
    %c0_29 = arith.constant 0 : index
    %36 = vector.load %arg12[%c0_28, %c0_29] : memref<76x256xbf16, #tpu.memory_space<vmem>>, vector<76x256xbf16>
    %c0_30 = arith.constant 0 : index
    %c0_31 = arith.constant 0 : index
    %37 = vector.load %arg13[%c0_30, %c0_31] : memref<1x256xf32, #tpu.memory_space<vmem>>, vector<1x256xf32>
    %cst_32 = arith.constant dense<0.000000e+00> : vector<8x256xf32>
    %38 = tpu.matmul %35, %36, %cst_32 {dimension_numbers = #tpu.dot_dimension_numbers<[1], [0], [0], [1], [0, 0, 1, 1], [], []>} : vector<8x76xbf16>, vector<76x256xbf16>, vector<8x256xf32> -> vector<8x256xf32>
    %39 = vector.broadcast %37 : vector<1x256xf32> to vector<8x256xf32>
    %40 = arith.addf %38, %39 : vector<8x256xf32>
    %cst_33 = arith.constant 0.000000e+00 : f32
    %41 = vector.broadcast %cst_33 : f32 to vector<8x256xf32>
    %42 = arith.maximumf %40, %41 : vector<8x256xf32>
    %43 = arith.truncf %42 : vector<8x256xf32> to vector<8x256xbf16>
    %c0_34 = arith.constant 0 : index
    %c0_35 = arith.constant 0 : index
    %44 = vector.load %arg14[%c0_34, %c0_35] : memref<256x256xbf16, #tpu.memory_space<vmem>>, vector<256x256xbf16>
    %c0_36 = arith.constant 0 : index
    %c0_37 = arith.constant 0 : index
    %45 = vector.load %arg15[%c0_36, %c0_37] : memref<1x256xf32, #tpu.memory_space<vmem>>, vector<1x256xf32>
    %cst_38 = arith.constant dense<0.000000e+00> : vector<8x256xf32>
    %46 = tpu.matmul %43, %44, %cst_38 {dimension_numbers = #tpu.dot_dimension_numbers<[1], [0], [0], [1], [0, 0, 1, 1], [], []>} : vector<8x256xbf16>, vector<256x256xbf16>, vector<8x256xf32> -> vector<8x256xf32>
    %47 = vector.broadcast %45 : vector<1x256xf32> to vector<8x256xf32>
    %48 = arith.addf %46, %47 : vector<8x256xf32>
    %cst_39 = arith.constant 0.000000e+00 : f32
    %49 = vector.broadcast %cst_39 : f32 to vector<8x256xf32>
    %50 = arith.maximumf %48, %49 : vector<8x256xf32>
    %51 = arith.truncf %50 : vector<8x256xf32> to vector<8x256xbf16>
    %c0_40 = arith.constant 0 : index
    %c0_41 = arith.constant 0 : index
    %52 = vector.load %arg16[%c0_40, %c0_41] : memref<256x256xbf16, #tpu.memory_space<vmem>>, vector<256x256xbf16>
    %c0_42 = arith.constant 0 : index
    %c0_43 = arith.constant 0 : index
    %53 = vector.load %arg17[%c0_42, %c0_43] : memref<1x256xf32, #tpu.memory_space<vmem>>, vector<1x256xf32>
    %cst_44 = arith.constant dense<0.000000e+00> : vector<8x256xf32>
    %54 = tpu.matmul %51, %52, %cst_44 {dimension_numbers = #tpu.dot_dimension_numbers<[1], [0], [0], [1], [0, 0, 1, 1], [], []>} : vector<8x256xbf16>, vector<256x256xbf16>, vector<8x256xf32> -> vector<8x256xf32>
    %55 = vector.broadcast %53 : vector<1x256xf32> to vector<8x256xf32>
    %56 = arith.addf %54, %55 : vector<8x256xf32>
    %cst_45 = arith.constant 0.000000e+00 : f32
    %57 = vector.broadcast %cst_45 : f32 to vector<8x256xf32>
    %58 = arith.maximumf %56, %57 : vector<8x256xf32>
    %59 = arith.truncf %58 : vector<8x256xf32> to vector<8x256xbf16>
    %c0_46 = arith.constant 0 : index
    %c0_47 = arith.constant 0 : index
    %60 = vector.load %arg18[%c0_46, %c0_47] : memref<256x128xbf16, #tpu.memory_space<vmem>>, vector<256x128xbf16>
    %c0_48 = arith.constant 0 : index
    %c0_49 = arith.constant 0 : index
    %61 = vector.load %arg19[%c0_48, %c0_49] : memref<1x128xf32, #tpu.memory_space<vmem>>, vector<1x128xf32>
    %cst_50 = arith.constant dense<0.000000e+00> : vector<8x128xf32>
    %62 = tpu.matmul %59, %60, %cst_50 {dimension_numbers = #tpu.dot_dimension_numbers<[1], [0], [0], [1], [0, 0, 1, 1], [], []>} : vector<8x256xbf16>, vector<256x128xbf16>, vector<8x128xf32> -> vector<8x128xf32>
    %63 = vector.broadcast %61 : vector<1x128xf32> to vector<8x128xf32>
    %64 = arith.addf %62, %63 : vector<8x128xf32>
    %cst_51 = arith.constant 0.000000e+00 : f32
    %65 = vector.broadcast %cst_51 : f32 to vector<8x128xf32>
    %66 = arith.maximumf %64, %65 : vector<8x128xf32>
    %c0_52 = arith.constant 0 : index
    %c0_53 = arith.constant 0 : index
    %67 = vector.load %arg29[%c0_52, %c0_53] : memref<8x128xf32, #tpu.memory_space<vmem>>, vector<8x128xf32>
    tpu.vector_store %arg29[%c0_52, %c0_53], %66 {strides = array<i32>} : memref<8x128xf32, #tpu.memory_space<vmem>>, vector<8x128xf32>,
    %c0_54 = arith.constant 0 : index
    %c0_55 = arith.constant 0 : index
    %68 = vector.load %arg3[%c0_54, %c0_55] : memref<8x64xf32, #tpu.memory_space<vmem>>, vector<8x64xf32>
    %69 = arith.truncf %68 : vector<8x64xf32> to vector<8x64xbf16>
    %c0_56 = arith.constant 0 : index
    %c0_57 = arith.constant 0 : index
    %70 = vector.load %arg20[%c0_56, %c0_57] : memref<64x256xbf16, #tpu.memory_space<vmem>>, vector<64x256xbf16>
    %c0_58 = arith.constant 0 : index
    %c0_59 = arith.constant 0 : index
    %71 = vector.load %arg21[%c0_58, %c0_59] : memref<1x256xf32, #tpu.memory_space<vmem>>, vector<1x256xf32>
    %cst_60 = arith.constant dense<0.000000e+00> : vector<8x256xf32>
    %72 = tpu.matmul %69, %70, %cst_60 {dimension_numbers = #tpu.dot_dimension_numbers<[1], [0], [0], [1], [0, 0, 1, 1], [], []>} : vector<8x64xbf16>, vector<64x256xbf16>, vector<8x256xf32> -> vector<8x256xf32>
    %73 = vector.broadcast %71 : vector<1x256xf32> to vector<8x256xf32>
    %74 = arith.addf %72, %73 : vector<8x256xf32>
    %cst_61 = arith.constant 0.000000e+00 : f32
    %75 = vector.broadcast %cst_61 : f32 to vector<8x256xf32>
    %76 = arith.maximumf %74, %75 : vector<8x256xf32>
    %77 = arith.truncf %76 : vector<8x256xf32> to vector<8x256xbf16>
    %c0_62 = arith.constant 0 : index
    %c0_63 = arith.constant 0 : index
    %78 = vector.load %arg22[%c0_62, %c0_63] : memref<256x256xbf16, #tpu.memory_space<vmem>>, vector<256x256xbf16>
    %c0_64 = arith.constant 0 : index
    %c0_65 = arith.constant 0 : index
    %79 = vector.load %arg23[%c0_64, %c0_65] : memref<1x256xf32, #tpu.memory_space<vmem>>, vector<1x256xf32>
    %cst_66 = arith.constant dense<0.000000e+00> : vector<8x256xf32>
    %80 = tpu.matmul %77, %78, %cst_66 {dimension_numbers = #tpu.dot_dimension_numbers<[1], [0], [0], [1], [0, 0, 1, 1], [], []>} : vector<8x256xbf16>, vector<256x256xbf16>, vector<8x256xf32> -> vector<8x256xf32>
    %81 = vector.broadcast %79 : vector<1x256xf32> to vector<8x256xf32>
    %82 = arith.addf %80, %81 : vector<8x256xf32>
    %cst_67 = arith.constant 0.000000e+00 : f32
    %83 = vector.broadcast %cst_67 : f32 to vector<8x256xf32>
    %84 = arith.maximumf %82, %83 : vector<8x256xf32>
    %85 = arith.truncf %84 : vector<8x256xf32> to vector<8x256xbf16>
    %c0_68 = arith.constant 0 : index
    %c0_69 = arith.constant 0 : index
    %86 = vector.load %arg24[%c0_68, %c0_69] : memref<256x256xbf16, #tpu.memory_space<vmem>>, vector<256x256xbf16>
    %c0_70 = arith.constant 0 : index
    %c0_71 = arith.constant 0 : index
    %87 = vector.load %arg25[%c0_70, %c0_71] : memref<1x256xf32, #tpu.memory_space<vmem>>, vector<1x256xf32>
    %cst_72 = arith.constant dense<0.000000e+00> : vector<8x256xf32>
    %88 = tpu.matmul %85, %86, %cst_72 {dimension_numbers = #tpu.dot_dimension_numbers<[1], [0], [0], [1], [0, 0, 1, 1], [], []>} : vector<8x256xbf16>, vector<256x256xbf16>, vector<8x256xf32> -> vector<8x256xf32>
    %89 = vector.broadcast %87 : vector<1x256xf32> to vector<8x256xf32>
    %90 = arith.addf %88, %89 : vector<8x256xf32>
    %cst_73 = arith.constant 0.000000e+00 : f32
    %91 = vector.broadcast %cst_73 : f32 to vector<8x256xf32>
    %92 = arith.maximumf %90, %91 : vector<8x256xf32>
    %93 = arith.truncf %92 : vector<8x256xf32> to vector<8x256xbf16>
    %c0_74 = arith.constant 0 : index
    %c0_75 = arith.constant 0 : index
    %94 = vector.load %arg26[%c0_74, %c0_75] : memref<256x128xbf16, #tpu.memory_space<vmem>>, vector<256x128xbf16>
    %c0_76 = arith.constant 0 : index
    %c0_77 = arith.constant 0 : index
    %95 = vector.load %arg27[%c0_76, %c0_77] : memref<1x128xf32, #tpu.memory_space<vmem>>, vector<1x128xf32>
    %cst_78 = arith.constant dense<0.000000e+00> : vector<8x128xf32>
    %96 = tpu.matmul %93, %94, %cst_78 {dimension_numbers = #tpu.dot_dimension_numbers<[1], [0], [0], [1], [0, 0, 1, 1], [], []>} : vector<8x256xbf16>, vector<256x128xbf16>, vector<8x128xf32> -> vector<8x128xf32>
    %97 = vector.broadcast %95 : vector<1x128xf32> to vector<8x128xf32>
    %98 = arith.addf %96, %97 : vector<8x128xf32>
    %cst_79 = arith.constant 0.000000e+00 : f32
    %99 = vector.broadcast %cst_79 : f32 to vector<8x128xf32>
    %100 = arith.maximumf %98, %99 : vector<8x128xf32>
    %c0_80 = arith.constant 0 : index
    %c0_81 = arith.constant 0 : index
    %101 = vector.load %arg30[%c0_80, %c0_81] : memref<8x128xf32, #tpu.memory_space<vmem>>, vector<8x128xf32>
    tpu.vector_store %arg30[%c0_80, %c0_81], %100 {strides = array<i32>} : memref<8x128xf32, #tpu.memory_space<vmem>>, vector<8x128xf32>,
    return
  }
  func.func @transform_0(%arg0: i32) -> (i32, i32) {
    %c0_i32 = arith.constant 0 : i32
    %c0_i32_0 = arith.constant 0 : i32
    return %arg0, %c0_i32 : i32, i32
  }
  func.func @transform_1(%arg0: i32) -> (i32, i32) {
    %c0_i32 = arith.constant 0 : i32
    %c0_i32_0 = arith.constant 0 : i32
    return %arg0, %c0_i32 : i32, i32
  }
  func.func @transform_2(%arg0: i32) -> (i32, i32) {
    %c0_i32 = arith.constant 0 : i32
    %c0_i32_0 = arith.constant 0 : i32
    return %arg0, %c0_i32 : i32, i32
  }
  func.func @transform_3(%arg0: i32) -> (i32, i32) {
    %c0_i32 = arith.constant 0 : i32
    %c0_i32_0 = arith.constant 0 : i32
    %c0_i32_1 = arith.constant 0 : i32
    return %c0_i32, %c0_i32_0 : i32, i32
  }
  func.func @transform_4(%arg0: i32) -> (i32, i32) {
    %c0_i32 = arith.constant 0 : i32
    %c0_i32_0 = arith.constant 0 : i32
    %c0_i32_1 = arith.constant 0 : i32
    return %c0_i32, %c0_i32_0 : i32, i32
  }
  func.func @transform_5(%arg0: i32) -> (i32, i32) {
    %c0_i32 = arith.constant 0 : i32
    %c0_i32_0 = arith.constant 0 : i32
    %c0_i32_1 = arith.constant 0 : i32
    return %c0_i32, %c0_i32_0 : i32, i32
  }
  func.func @transform_6(%arg0: i32) -> (i32, i32) {
    %c0_i32 = arith.constant 0 : i32
    %c0_i32_0 = arith.constant 0 : i32
    %c0_i32_1 = arith.constant 0 : i32
    return %c0_i32, %c0_i32_0 : i32, i32
  }
  func.func @transform_7(%arg0: i32) -> (i32, i32) {
    %c0_i32 = arith.constant 0 : i32
    %c0_i32_0 = arith.constant 0 : i32
    %c0_i32_1 = arith.constant 0 : i32
    return %c0_i32, %c0_i32_0 : i32, i32
  }
  func.func @transform_8(%arg0: i32) -> (i32, i32) {
    %c0_i32 = arith.constant 0 : i32
    %c0_i32_0 = arith.constant 0 : i32
    %c0_i32_1 = arith.constant 0 : i32
    return %c0_i32, %c0_i32_0 : i32, i32
  }
  func.func @transform_9(%arg0: i32) -> (i32, i32) {
    %c0_i32 = arith.constant 0 : i32
    %c0_i32_0 = arith.constant 0 : i32
    %c0_i32_1 = arith.constant 0 : i32
    return %c0_i32, %c0_i32_0 : i32, i32
  }
  func.func @transform_10(%arg0: i32) -> (i32, i32) {
    %c0_i32 = arith.constant 0 : i32
    %c0_i32_0 = arith.constant 0 : i32
    %c0_i32_1 = arith.constant 0 : i32
    return %c0_i32, %c0_i32_0 : i32, i32
  }
  func.func @transform_11(%arg0: i32) -> (i32, i32) {
    %c0_i32 = arith.constant 0 : i32
    %c0_i32_0 = arith.constant 0 : i32
    %c0_i32_1 = arith.constant 0 : i32
    return %c0_i32, %c0_i32_0 : i32, i32
  }
  func.func @transform_12(%arg0: i32) -> (i32, i32) {
    %c0_i32 = arith.constant 0 : i32
    %c0_i32_0 = arith.constant 0 : i32
    %c0_i32_1 = arith.constant 0 : i32
    return %c0_i32, %c0_i32_0 : i32, i32
  }
  func.func @transform_13(%arg0: i32) -> (i32, i32) {
    %c0_i32 = arith.constant 0 : i32
    %c0_i32_0 = arith.constant 0 : i32
    %c0_i32_1 = arith.constant 0 : i32
    return %c0_i32, %c0_i32_0 : i32, i32
  }
  func.func @transform_14(%arg0: i32) -> (i32, i32) {
    %c0_i32 = arith.constant 0 : i32
    %c0_i32_0 = arith.constant 0 : i32
    %c0_i32_1 = arith.constant 0 : i32
    return %c0_i32, %c0_i32_0 : i32, i32
  }
  func.func @transform_15(%arg0: i32) -> (i32, i32) {
    %c0_i32 = arith.constant 0 : i32
    %c0_i32_0 = arith.constant 0 : i32
    %c0_i32_1 = arith.constant 0 : i32
    return %c0_i32, %c0_i32_0 : i32, i32
  }
  func.func @transform_16(%arg0: i32) -> (i32, i32) {
    %c0_i32 = arith.constant 0 : i32
    %c0_i32_0 = arith.constant 0 : i32
    %c0_i32_1 = arith.constant 0 : i32
    return %c0_i32, %c0_i32_0 : i32, i32
  }
  func.func @transform_17(%arg0: i32) -> (i32, i32) {
    %c0_i32 = arith.constant 0 : i32
    %c0_i32_0 = arith.constant 0 : i32
    %c0_i32_1 = arith.constant 0 : i32
    return %c0_i32, %c0_i32_0 : i32, i32
  }
  func.func @transform_18(%arg0: i32) -> (i32, i32) {
    %c0_i32 = arith.constant 0 : i32
    %c0_i32_0 = arith.constant 0 : i32
    %c0_i32_1 = arith.constant 0 : i32
    return %c0_i32, %c0_i32_0 : i32, i32
  }
  func.func @transform_19(%arg0: i32) -> (i32, i32) {
    %c0_i32 = arith.constant 0 : i32
    %c0_i32_0 = arith.constant 0 : i32
    %c0_i32_1 = arith.constant 0 : i32
    return %c0_i32, %c0_i32_0 : i32, i32
  }
  func.func @transform_20(%arg0: i32) -> (i32, i32) {
    %c0_i32 = arith.constant 0 : i32
    %c0_i32_0 = arith.constant 0 : i32
    %c0_i32_1 = arith.constant 0 : i32
    return %c0_i32, %c0_i32_0 : i32, i32
  }
  func.func @transform_21(%arg0: i32) -> (i32, i32) {
    %c0_i32 = arith.constant 0 : i32
    %c0_i32_0 = arith.constant 0 : i32
    %c0_i32_1 = arith.constant 0 : i32
    return %c0_i32, %c0_i32_0 : i32, i32
  }
  func.func @transform_22(%arg0: i32) -> (i32, i32) {
    %c0_i32 = arith.constant 0 : i32
    %c0_i32_0 = arith.constant 0 : i32
    %c0_i32_1 = arith.constant 0 : i32
    return %c0_i32, %c0_i32_0 : i32, i32
  }
  func.func @transform_23(%arg0: i32) -> (i32, i32) {
    %c0_i32 = arith.constant 0 : i32
    %c0_i32_0 = arith.constant 0 : i32
    %c0_i32_1 = arith.constant 0 : i32
    return %c0_i32, %c0_i32_0 : i32, i32
  }
  func.func @transform_24(%arg0: i32) -> (i32, i32) {
    %c0_i32 = arith.constant 0 : i32
    %c0_i32_0 = arith.constant 0 : i32
    %c0_i32_1 = arith.constant 0 : i32
    return %c0_i32, %c0_i32_0 : i32, i32
  }
  func.func @transform_25(%arg0: i32) -> (i32, i32) {
    %c0_i32 = arith.constant 0 : i32
    %c0_i32_0 = arith.constant 0 : i32
    %c0_i32_1 = arith.constant 0 : i32
    return %c0_i32, %c0_i32_0 : i32, i32
  }
  func.func @transform_26(%arg0: i32) -> (i32, i32) {
    %c0_i32 = arith.constant 0 : i32
    %c0_i32_0 = arith.constant 0 : i32
    %c0_i32_1 = arith.constant 0 : i32
    return %c0_i32, %c0_i32_0 : i32, i32
  }
  func.func @transform_27(%arg0: i32) -> (i32, i32) {
    %c0_i32 = arith.constant 0 : i32
    %c0_i32_0 = arith.constant 0 : i32
    return %arg0, %c0_i32 : i32, i32
  }
  func.func @transform_28(%arg0: i32) -> (i32, i32) {
    %c0_i32 = arith.constant 0 : i32
    %c0_i32_0 = arith.constant 0 : i32
    return %arg0, %c0_i32 : i32, i32
  }
  func.func @transform_29(%arg0: i32) -> (i32, i32) {
    %c0_i32 = arith.constant 0 : i32
    %c0_i32_0 = arith.constant 0 : i32
    return %arg0, %c0_i32 : i32, i32
  }
}

</mosaic_0001>

<bundles_post_ra>
// kernel: tpu_custom_call.1
= control target key start
LH: loop header
LB: loop body
LE: loop exit
PB: predicated region body
PF: predicated region fallthrough
CT: control target
= control target key end

     0   :  { %s4332_s6 = smov 1   ;;  %s4333_s10 = smov 2   ;;  %s4743_s0 = inlined_call_operand.smem [shape: u32[30], index: -1, kind: input, shape index: {}] }
   0x1   :  { %s4395_s5 = sld [smem:[%s4743_s0]]   ;;  %s4334_s14 = smov 3  }
   0x2   :  { %s4400_s9 = sld [smem:[%s4743_s0 + %s4332_s6]]   ;;  %s4335_s18 = smov 4  }
   0x3   :  { %s4405_s13 = sld [smem:[%s4743_s0 + %s4333_s10]]   ;;  %s4336_s22 = smov 5  }
   0x4   :  { %s4410_s17 = sld [smem:[%s4743_s0 + %s4334_s14]]   ;;  %s4337_s26 = smov 6  }
   0x5   :  { %s4415_s21 = sld [smem:[%s4743_s0 + %s4335_s18]]   ;;  %s4338_s30 = smov 7  }
   0x6   :  { %s4420_s25 = sld [smem:[%s4743_s0 + %s4336_s22]]   ;;  %s4339_s4 = smov 8  }
   0x7   :  { %s4425_s29 = sld [smem:[%s4743_s0 + %s4337_s26]]   ;;  %s4340_s10 = smov 9  }
   0x8   :  { %s4430_s3 = sld [smem:[%s4743_s0 + %s4338_s30]]   ;;  %s4341_s15 = smov 10  }
   0x9   :  { %s4435_s8 = sld [smem:[%s4743_s0 + %s4339_s4]]   ;;  %s4342_s20 = smov 11  }
   0xa   :  { %s4440_s14 = sld [smem:[%s4743_s0 + %s4340_s10]]   ;;  %s4343_s26 = smov 12  }
   0xb   :  { %4749 = sst [smem:[#allocation47_spill]] %s4415_s21  ;;  %s4344_s1 = smov 13  }
   0xc   :  { %s4445_s19 = sld [smem:[%s4743_s0 + %s4341_s15]]   ;;  %s4345_s7 = smov 14  }
   0xd   :  { %4750 = sst [smem:[#allocation48_spill]] %s4425_s29  ;;  %s4346_s15 = smov 15  }
   0xe   :  { %s4450_s24 = sld [smem:[%s4743_s0 + %s4342_s20]]   ;;  %s4347_s22 = smov 16  }
   0xf   :  { %4751 = sst [smem:[#allocation49_spill]] %s4435_s8  ;;  %s4348_s28 = smov 17  }
  0x10   :  { %s4455_s30 = sld [smem:[%s4743_s0 + %s4343_s26]]  }
  0x11   :  { %s4460_s6 = sld [smem:[%s4743_s0 + %s4344_s1]]  }
  0x12   :  { %s4465_s12 = sld [smem:[%s4743_s0 + %s4345_s7]]   ;;  %s4349_s7 = smov 18  }
  0x13   :  { %s4470_s20 = sld [smem:[%s4743_s0 + %s4346_s15]]   ;;  %s4350_s15 = smov 19  }
  0x14   :  { %s4475_s27 = sld [smem:[%s4743_s0 + %s4347_s22]]   ;;  %s4351_s22 = smov 20  }
  0x15   :  { %s4480_s4 = sld [smem:[%s4743_s0 + %s4348_s28]]   ;;  %s4352_s28 = smov 21  }
  0x16   :  { %s4485_s8 = sld [smem:[%s4743_s0 + %s4349_s7]]   ;;  %s4353_s7 = smov 22  }
  0x17   :  { %s4490_s29 = sld [smem:[%s4743_s0 + %s4350_s15]]   ;;  %s4354_s15 = smov 23  }
  0x18   :  { %s4495_s21 = sld [smem:[%s4743_s0 + %s4351_s22]]   ;;  %s4355_s22 = smov 24  }
  0x19   :  { %4752 = sst [smem:[#allocation50_spill]] %s4470_s20 }
  0x1b   :  { %4753 = sst [smem:[#allocation51_spill]] %s4480_s4 }
  0x1c   :  { %4754 = sst [smem:[#allocation52_spill]] %s4485_s8 }
  0x1d   :  { %4755 = sst [smem:[#allocation53_spill]] %s4490_s29 }
  0x1e   :  { %4756 = sst [smem:[#allocation54_spill]] %s4495_s21 }
  0x1f   :  { %s4500_s4 = sld [smem:[%s4743_s0 + %s4352_s28]]   ;;  %s4356_s28 = smov 25  }
  0x20   :  { %s4505_s8 = sld [smem:[%s4743_s0 + %s4353_s7]]   ;;  %s4357_s7 = smov 26  }
  0x21   :  { %s4510_s29 = sld [smem:[%s4743_s0 + %s4354_s15]]   ;;  %s4358_s15 = smov 27  }
  0x22   :  { %s4515_s21 = sld [smem:[%s4743_s0 + %s4355_s22]]   ;;  %s4359_s22 = smov 28  }
  0x23   :  { %s4520_s20 = sld [smem:[%s4743_s0 + %s4356_s28]]   ;;  %s4360_s28 = smov 29  }
  0x26   :  { %4757 = sst [smem:[#allocation55_spill]] %s4505_s8 }
  0x27   :  { %4758 = sst [smem:[#allocation56_spill]] %s4510_s29 }
  0x28   :  { %4759 = sst [smem:[#allocation57_spill]] %s4515_s21 }
  0x29   :  { %4760 = sst [smem:[#allocation58_spill]] %s4520_s20 }
  0x2a   :  { %s4525_s8 = sld [smem:[%s4743_s0 + %s4357_s7]]  }
  0x2b   :  { %s4530_s29 = sld [smem:[%s4743_s0 + %s4358_s15]]  }
  0x2c   :  { %s4535_s21 = sld [smem:[%s4743_s0 + %s4359_s22]]  }
  0x2d   :  { %s4540_s20 = sld [smem:[%s4743_s0 + %s4360_s28]]  }
  0x2e   :  { %65 = vsyncpa [#allocation3], 0 }
  0x2f   :  { %66 = vsyncpa [#allocation6], 0 }
  0x30   :  { %67 = vsyncpa [#allocation9], 0 }
  0x31   :  { %68 = vsyncpa [#allocation12], 0 }
  0x32   :  { %69 = vsyncpa [#allocation15], 0 }
  0x33   :  { %70 = vsyncpa [#allocation18], 0 }
  0x34   :  { %71 = vsyncpa [#allocation21], 0 }
  0x35   :  { %72 = vsyncpa [#allocation24], 0 }
  0x36   :  { %73 = vsyncpa [#allocation27], 0 }
  0x37   :  { %74 = vsyncpa [#allocation30], 0 }
  0x38   :  { %75 = vsyncpa [#allocation4], 0 }
  0x39   :  { %76 = vsyncpa [#allocation33], 0  ;;  %s4361_s7 = smov [#allocation5]   ;;  %s4362_s11 = smov [#allocation8]  }
  0x3a   :  { %s93_s10 = sshll.u32 %s4361_s7, 4  ;;  %s112_s0 = sshll.u32 %s4362_s11, 4  ;;  %s94_s10 = int_to_ptr.vmem [resolvable:$true] %s93_s10  ;;  %s4542_s0 = int_to_ptr.vmem [resolvable:$true] %s112_s0 }
  0x3b   :  { %s3846_s15 = scalar_lea.hbm %s4400_s9, 128 }
  0x3c   :  { %p3847_p0 = scmp.ne.s32.totalorder %s4400_s9, %s3846_s15  ;;  %p3850_p1 = scmp.lt.u32.totalorder %s3846_s15, %s4400_s9 }
  0x3e   :  { %p3852_p2 = pnand %p3850_p1, %p3847_p0 }
  0x40   :  { %3855 = shalt.err (!%p3852_p2)
}
  0x41   :  { %s3856_s16 = scalar_lea.vmem %s94_s10, 128  ;;  %p3861_p4 = scmp.lt.s32.totalorder %s94_s10, %s94_s10 }
  0x42   :  { %p3857_p3 = scmp.ne.s32.totalorder %s94_s10, %s3856_s16  ;;  %p3862_p5 = scmp.lt.s32.totalorder %s3856_s16, %s3856_s16 }
  0x44   :  { %p3863_p6 = por %p3862_p5, %p3861_p4 }
  0x46   :  { %p3864_p7 = pnand %p3863_p6, %p3857_p3 }
  0x48   :  { %3867 = shalt.err (!%p3864_p7)
}
  0x49   :  { %96 = dma.hbm_to_vmem [thread:$0]  %s4400_s9, 128, %s94_s10, [#allocation6]  }
  0x4a   :  { %s3868_s18 = scalar_lea.hbm %s4410_s17, 3456 }
  0x4b   :  { %p3869_p8 = scmp.ne.s32.totalorder %s4410_s17, %s3868_s18  ;;  %p3872_p9 = scmp.lt.u32.totalorder %s3868_s18, %s4410_s17 }
  0x4d   :  { %p3874_p10 = pnand %p3872_p9, %p3869_p8 }
  0x4f   :  { %3877 = shalt.err (!%p3874_p10)
}
  0x50   :  { %s3878_s22 = scalar_lea.vmem %s4542_s0, 3456  ;;  %p3883_p12 = scmp.lt.s32.totalorder %s4542_s0, %s4542_s0 }
  0x51   :  { %p3879_p11 = scmp.ne.s32.totalorder %s4542_s0, %s3878_s22  ;;  %p3884_p13 = scmp.lt.s32.totalorder %s3878_s22, %s3878_s22 }
  0x53   :  { %p3885_p0 = por %p3884_p13, %p3883_p12 }
  0x55   :  { %p3886_p1 = pnand %p3885_p0, %p3879_p11 }
  0x57   :  { %3889 = shalt.err (!%p3886_p1)
}
  0x58   :  { %s4363_s23 = smov 128   ;;  %s4364_s9 = smov 8  }
  0x59   :  { %118 = dma.hbm_to_vmem [thread:$0]  %s4410_s17, 3456, %s4542_s0, [#allocation9], %s4363_s23, %s4363_s23, %s4364_s9  }
  0x5a   :  { %s4365_s26 = smov [#allocation11]   ;;  %s4366_s1 = smov [#allocation14]  }
  0x5b   :  { %s140_s28 = sshll.u32 %s4365_s26, 4  ;;  %s167_s2 = sshll.u32 %s4366_s1, 4  ;;  %s141_s28 = int_to_ptr.vmem [resolvable:$true] %s140_s28  ;;  %s168_s2 = int_to_ptr.vmem [resolvable:$true] %s167_s2 }
  0x5c   :  { %s3890_s7 = scalar_lea.hbm %s4430_s3, 4096 }
  0x5d   :  { %p3891_p2 = scmp.ne.s32.totalorder %s4430_s3, %s3890_s7  ;;  %p3894_p3 = scmp.lt.u32.totalorder %s3890_s7, %s4430_s3 }
  0x5f   :  { %p3896_p4 = pnand %p3894_p3, %p3891_p2 }
  0x61   :  { %3899 = shalt.err (!%p3896_p4)
}
  0x62   :  { %s3900_s10 = scalar_lea.vmem %s141_s28, 4096  ;;  %p3905_p6 = scmp.lt.s32.totalorder %s141_s28, %s141_s28 }
  0x63   :  { %p3901_p5 = scmp.ne.s32.totalorder %s141_s28, %s3900_s10  ;;  %p3906_p7 = scmp.lt.s32.totalorder %s3900_s10, %s3900_s10 }
  0x65   :  { %p3907_p8 = por %p3906_p7, %p3905_p6 }
  0x67   :  { %p3908_p9 = pnand %p3907_p8, %p3901_p5 }
  0x69   :  { %3911 = shalt.err (!%p3908_p9)
}
  0x6a   :  { %146 = dma.hbm_to_vmem [thread:$0]  %s4430_s3, 4096, %s141_s28, [#allocation12], %s4363_s23, %s4363_s23, %s4364_s9  }
  0x6b   :  { %s3912_s17 = scalar_lea.hbm %s4445_s19, 32 }
  0x6c   :  { %p3913_p10 = scmp.ne.s32.totalorder %s4445_s19, %s3912_s17  ;;  %p3916_p11 = scmp.lt.u32.totalorder %s3912_s17, %s4445_s19 }
  0x6e   :  { %p3918_p12 = pnand %p3916_p11, %p3913_p10 }
  0x70   :  { %3921 = shalt.err (!%p3918_p12)
}
  0x71   :  { %s3922_s11 = scalar_lea.vmem %s168_s2, 32  ;;  %p3927_p0 = scmp.lt.s32.totalorder %s168_s2, %s168_s2 }
  0x72   :  { %p3923_p13 = scmp.ne.s32.totalorder %s168_s2, %s3922_s11  ;;  %p3928_p1 = scmp.lt.s32.totalorder %s3922_s11, %s3922_s11 }
  0x74   :  { %p3929_p2 = por %p3928_p1, %p3927_p0 }
  0x76   :  { %p3930_p3 = pnand %p3929_p2, %p3923_p13 }
  0x78   :  { %3933 = shalt.err (!%p3930_p3)
}
  0x79   :  { %170 = dma.hbm_to_vmem [thread:$0]  %s4445_s19, 32, %s168_s2, [#allocation15]  }
  0x7a   :  { %s4367_s0 = smov [#allocation17]   ;;  %s4368_s3 = smov [#allocation20]  }
  0x7b   :  { %s189_s15 = sshll.u32 %s4367_s0, 4  ;;  %s211_s16 = sshll.u32 %s4368_s3, 4  ;;  %s190_s15 = int_to_ptr.vmem [resolvable:$true] %s189_s15  ;;  %s212_s16 = int_to_ptr.vmem [resolvable:$true] %s211_s16 }
  0x7c   :  { %s3934_s18 = scalar_lea.hbm %s4455_s30, 32 }
  0x7d   :  { %p3935_p4 = scmp.ne.s32.totalorder %s4455_s30, %s3934_s18  ;;  %p3938_p5 = scmp.lt.u32.totalorder %s3934_s18, %s4455_s30 }
  0x7f   :  { %p3940_p6 = pnand %p3938_p5, %p3935_p4 }
  0x81   :  { %3943 = shalt.err (!%p3940_p6)
}
  0x82   :  { %s3944_s22 = scalar_lea.vmem %s190_s15, 32  ;;  %p3949_p8 = scmp.lt.s32.totalorder %s190_s15, %s190_s15 }
  0x83   :  { %p3945_p7 = scmp.ne.s32.totalorder %s190_s15, %s3944_s22  ;;  %p3950_p9 = scmp.lt.s32.totalorder %s3944_s22, %s3944_s22 }
  0x85   :  { %p3951_p10 = por %p3950_p9, %p3949_p8 }
  0x87   :  { %p3952_p11 = pnand %p3951_p10, %p3945_p7 }
  0x89   :  { %3955 = shalt.err (!%p3952_p11)
}
  0x8a   :  { %192 = dma.hbm_to_vmem [thread:$0]  %s4455_s30, 32, %s190_s15, [#allocation18]  }
  0x8b   :  { %s3956_s19 = scalar_lea.hbm %s4465_s12, 32 }
  0x8c   :  { %p3957_p12 = scmp.ne.s32.totalorder %s4465_s12, %s3956_s19  ;;  %p3960_p13 = scmp.lt.u32.totalorder %s3956_s19, %s4465_s12 }
  0x8e   :  { %p3962_p0 = pnand %p3960_p13, %p3957_p12 }
  0x90   :  { %3965 = shalt.err (!%p3962_p0)
}
  0x91   :  { %s3966_s26 = scalar_lea.vmem %s212_s16, 32  ;;  %p3971_p2 = scmp.lt.s32.totalorder %s212_s16, %s212_s16 }
  0x92   :  { %p3967_p1 = scmp.ne.s32.totalorder %s212_s16, %s3966_s26  ;;  %p3972_p3 = scmp.lt.s32.totalorder %s3966_s26, %s3966_s26 }
  0x94   :  { %p3973_p4 = por %p3972_p3, %p3971_p2 }
  0x96   :  { %p3974_p5 = pnand %p3973_p4, %p3967_p1 }
  0x98   :  { %3977 = shalt.err (!%p3974_p5)
}
  0x99   :  { %214 = dma.hbm_to_vmem [thread:$0]  %s4465_s12, 32, %s212_s16, [#allocation21]  }
  0x9a   :  { %s4369_s28 = smov [#allocation23]   ;;  %s4370_s30 = smov [#allocation26]  }
  0x9b   :  { %s233_s1 = sshll.u32 %s4369_s28, 4  ;;  %s260_s2 = sshll.u32 %s4370_s30, 4  ;;  %s234_s1 = int_to_ptr.vmem [resolvable:$true] %s233_s1  ;;  %s4579_s2 = int_to_ptr.vmem [resolvable:$true] %s260_s2 }
  0x9c   :  { %s3978_s7 = scalar_lea.hbm %s4475_s27, 32 }
  0x9d   :  { %p3979_p6 = scmp.ne.s32.totalorder %s4475_s27, %s3978_s7  ;;  %p3982_p7 = scmp.lt.u32.totalorder %s3978_s7, %s4475_s27 }
  0x9f   :  { %p3984_p8 = pnand %p3982_p7, %p3979_p6 }
  0xa1   :  { %3987 = shalt.err (!%p3984_p8)
}
  0xa2   :  { %s3988_s10 = scalar_lea.vmem %s234_s1, 32  ;;  %p3993_p10 = scmp.lt.s32.totalorder %s234_s1, %s234_s1 }
  0xa3   :  { %p3989_p9 = scmp.ne.s32.totalorder %s234_s1, %s3988_s10  ;;  %p3994_p11 = scmp.lt.s32.totalorder %s3988_s10, %s3988_s10 }
  0xa5   :  { %p3995_p12 = por %p3994_p11, %p3993_p10 }
  0xa7   :  { %p3996_p13 = pnand %p3995_p12, %p3989_p9 }
  0xa9   :  { %3999 = shalt.err (!%p3996_p13)
}
  0xaa   :  { %236 = dma.hbm_to_vmem [thread:$0]  %s4475_s27, 32, %s234_s1, [#allocation24]  }
  0xab   :  { %s4000_s12 = scalar_lea.hbm %s4500_s4, 4096 }
  0xac   :  { %p4001_p0 = scmp.ne.s32.totalorder %s4500_s4, %s4000_s12  ;;  %p4004_p1 = scmp.lt.u32.totalorder %s4000_s12, %s4500_s4 }
  0xae   :  { %p4006_p2 = pnand %p4004_p1, %p4001_p0 }
  0xb0   :  { %4009 = shalt.err (!%p4006_p2)
}
  0xb1   :  { %s4010_s17 = scalar_lea.vmem %s4579_s2, 4096  ;;  %p4015_p4 = scmp.lt.s32.totalorder %s4579_s2, %s4579_s2 }
  0xb2   :  { %p4011_p3 = scmp.ne.s32.totalorder %s4579_s2, %s4010_s17  ;;  %p4016_p5 = scmp.lt.s32.totalorder %s4010_s17, %s4010_s17 }
  0xb4   :  { %p4017_p6 = por %p4016_p5, %p4015_p4 }
  0xb6   :  { %p4018_p7 = pnand %p4017_p6, %p4011_p3 }
  0xb8   :  { %4021 = shalt.err (!%p4018_p7)
}
  0xb9   :  { %266 = dma.hbm_to_vmem [thread:$0]  %s4500_s4, 4096, %s4579_s2, [#allocation27], %s4363_s23, %s4363_s23, %s4364_s9  }
  0xba   :  { %s4371_s27 = smov [#allocation2]   ;;  %s4372_s0 = smov [#allocation7]  }
  0xbb   :  { %s83_s11 = sshll.u32 %s4371_s27, 4  ;;  %s103_s15 = sshll.u32 %s4372_s0, 4  ;;  %s84_s11 = int_to_ptr.vmem [resolvable:$true] %s83_s11  ;;  %s104_s15 = int_to_ptr.vmem [resolvable:$true] %s103_s15 }
  0xbc   :  { %s4022_s3 = scalar_lea.hbm %s4395_s5, 256 }
  0xbd   :  { %p4023_p8 = scmp.ne.s32.totalorder %s4395_s5, %s4022_s3  ;;  %p4026_p9 = scmp.lt.u32.totalorder %s4022_s3, %s4395_s5 }
  0xbf   :  { %p4028_p10 = pnand %p4026_p9, %p4023_p8 }
  0xc1   :  { %4031 = shalt.err (!%p4028_p10)
}
  0xc2   :  { %s4032_s16 = scalar_lea.vmem %s84_s11, 256  ;;  %p4037_p12 = scmp.lt.s32.totalorder %s84_s11, %s84_s11 }
  0xc3   :  { %p4033_p11 = scmp.ne.s32.totalorder %s84_s11, %s4032_s16  ;;  %p4038_p13 = scmp.lt.s32.totalorder %s4032_s16, %s4032_s16 }
  0xc5   :  { %p4039_p0 = por %p4038_p13, %p4037_p12 }
  0xc7   :  { %p4040_p1 = pnand %p4039_p0, %p4033_p11 }
  0xc9   :  { %4043 = shalt.err (!%p4040_p1)
}
  0xca   :  { %86 = dma.hbm_to_vmem [thread:$0]  %s4395_s5, 256, %s84_s11, [#allocation3]  }
  0xcb   :  { %s4044_s4 = scalar_lea.hbm %s4405_s13, 128 }
  0xcc   :  { %p4045_p2 = scmp.ne.s32.totalorder %s4405_s13, %s4044_s4  ;;  %p4048_p3 = scmp.lt.u32.totalorder %s4044_s4, %s4405_s13 }
  0xce   :  { %p4050_p4 = pnand %p4048_p3, %p4045_p2 }
  0xd0   :  { %4053 = shalt.err (!%p4050_p4)
}
  0xd1   :  { %s4054_s18 = scalar_lea.vmem %s104_s15, 128  ;;  %p4059_p6 = scmp.lt.s32.totalorder %s104_s15, %s104_s15 }
  0xd2   :  { %p4055_p5 = scmp.ne.s32.totalorder %s104_s15, %s4054_s18  ;;  %p4060_p7 = scmp.lt.s32.totalorder %s4054_s18, %s4054_s18 }
  0xd4   :  { %p4061_p8 = por %p4060_p7, %p4059_p6 }
  0xd6   :  { %p4062_p9 = pnand %p4061_p8, %p4055_p5 }
  0xd8   :  { %4065 = shalt.err (!%p4062_p9)
}
  0xd9   :  { %106 = dma.hbm_to_vmem [thread:$0]  %s4405_s13, 128, %s104_s15, [#allocation6]  }
  0xda   :  { %s4373_s22 = smov [#allocation10]   ;;  %s4374_s5 = smov [#allocation13]  }
  0xdb   :  { %s126_s19 = sshll.u32 %s4373_s22, 4  ;;  %s154_s26 = sshll.u32 %s4374_s5, 4  ;;  %s127_s19 = int_to_ptr.vmem [resolvable:$true] %s126_s19  ;;  %s4605_s26 = int_to_ptr.vmem [resolvable:$true] %s154_s26 }
  0xdc   :  { %s4066_s28 = scalar_lea.hbm %s4420_s25, 4096 }
  0xdd   :  { %p4067_p10 = scmp.ne.s32.totalorder %s4420_s25, %s4066_s28  ;;  %p4070_p11 = scmp.lt.u32.totalorder %s4066_s28, %s4420_s25 }
  0xdf   :  { %p4072_p12 = pnand %p4070_p11, %p4067_p10 }
  0xe1   :  { %4075 = shalt.err (!%p4072_p12)
}
  0xe2   :  { %s4076_s1 = scalar_lea.vmem %s127_s19, 4096  ;;  %p4081_p0 = scmp.lt.s32.totalorder %s127_s19, %s127_s19 }
  0xe3   :  { %p4077_p13 = scmp.ne.s32.totalorder %s127_s19, %s4076_s1  ;;  %p4082_p1 = scmp.lt.s32.totalorder %s4076_s1, %s4076_s1 }
  0xe5   :  { %p4083_p2 = por %p4082_p1, %p4081_p0 }
  0xe7   :  { %p4084_p3 = pnand %p4083_p2, %p4077_p13 }
  0xe9   :  { %4087 = shalt.err (!%p4084_p3)
}
  0xea   :  { %132 = dma.hbm_to_vmem [thread:$0]  %s4420_s25, 4096, %s127_s19, [#allocation9], %s4363_s23, %s4363_s23, %s4364_s9  }
  0xeb   :  { %s4088_s13 = scalar_lea.hbm %s4440_s14, 4096 }
  0xec   :  { %p4089_p4 = scmp.ne.s32.totalorder %s4440_s14, %s4088_s13  ;;  %p4092_p5 = scmp.lt.u32.totalorder %s4088_s13, %s4440_s14 }
  0xee   :  { %p4094_p6 = pnand %p4092_p5, %p4089_p4 }
  0xf0   :  { %4097 = shalt.err (!%p4094_p6)
}
  0xf1   :  { %s4098_s30 = scalar_lea.vmem %s4605_s26, 4096  ;;  %p4103_p8 = scmp.lt.s32.totalorder %s4605_s26, %s4605_s26 }
  0xf2   :  { %p4099_p7 = scmp.ne.s32.totalorder %s4605_s26, %s4098_s30  ;;  %p4104_p9 = scmp.lt.s32.totalorder %s4098_s30, %s4098_s30 }
  0xf4   :  { %p4105_p10 = por %p4104_p9, %p4103_p8 }
  0xf6   :  { %p4106_p11 = pnand %p4105_p10, %p4099_p7 }
  0xf8   :  { %4109 = shalt.err (!%p4106_p11)
}
  0xf9   :  { %160 = dma.hbm_to_vmem [thread:$0]  %s4440_s14, 4096, %s4605_s26, [#allocation12], %s4363_s23, %s4363_s23, %s4364_s9  }
  0xfa   :  { %s4375_s25 = smov [#allocation16]   ;;  %s4376_s7 = smov [#allocation19]  }
  0xfb   :  { %s176_s2 = sshll.u32 %s4375_s25, 4  ;;  %s198_s10 = sshll.u32 %s4376_s7, 4  ;;  %s177_s2 = int_to_ptr.vmem [resolvable:$true] %s176_s2  ;;  %s4626_s10 = int_to_ptr.vmem [resolvable:$true] %s198_s10 }
  0xfc   :  { %s4110_s12 = scalar_lea.hbm %s4450_s24, 1280 }
  0xfd   :  { %p4111_p12 = scmp.ne.s32.totalorder %s4450_s24, %s4110_s12  ;;  %p4114_p13 = scmp.lt.u32.totalorder %s4110_s12, %s4450_s24 }
  0xff   :  { %p4116_p0 = pnand %p4114_p13, %p4111_p12 }
 0x101   :  { %4119 = shalt.err (!%p4116_p0)
}
 0x102   :  { %s4120_s17 = scalar_lea.vmem %s177_s2, 1280  ;;  %p4125_p2 = scmp.lt.s32.totalorder %s177_s2, %s177_s2 }
 0x103   :  { %p4121_p1 = scmp.ne.s32.totalorder %s177_s2, %s4120_s17  ;;  %p4126_p3 = scmp.lt.s32.totalorder %s4120_s17, %s4120_s17 }
 0x105   :  { %p4127_p4 = por %p4126_p3, %p4125_p2 }
 0x107   :  { %p4128_p5 = pnand %p4127_p4, %p4121_p1 }
 0x109   :  { %4131 = shalt.err (!%p4128_p5)
}
 0x10a   :  { %182 = dma.hbm_to_vmem [thread:$0]  %s4450_s24, 1280, %s177_s2, [#allocation15], %s4363_s23, %s4363_s23, %s4364_s9  }
 0x10b   :  { %s4132_s14 = scalar_lea.hbm %s4460_s6, 4096 }
 0x10c   :  { %p4133_p6 = scmp.ne.s32.totalorder %s4460_s6, %s4132_s14  ;;  %p4136_p7 = scmp.lt.u32.totalorder %s4132_s14, %s4460_s6 }
 0x10e   :  { %p4138_p8 = pnand %p4136_p7, %p4133_p6 }
 0x110   :  { %4141 = shalt.err (!%p4138_p8)
}
 0x111   :  { %s4142_s27 = scalar_lea.vmem %s4626_s10, 4096  ;;  %p4147_p10 = scmp.lt.s32.totalorder %s4626_s10, %s4626_s10 }
 0x112   :  { %p4143_p9 = scmp.ne.s32.totalorder %s4626_s10, %s4142_s27  ;;  %p4148_p11 = scmp.lt.s32.totalorder %s4142_s27, %s4142_s27 }
 0x114   :  { %p4149_p12 = por %p4148_p11, %p4147_p10 }
 0x116   :  { %p4150_p13 = pnand %p4149_p12, %p4143_p9 }
 0x118   :  { %4153 = shalt.err (!%p4150_p13)
}
 0x119   :  { %s4761_s24 = sld [smem:[#allocation50_spill]]  ;;  %s4377_s11 = smov [#allocation22]  }
 0x11a   :  { %204 = dma.hbm_to_vmem [thread:$0]  %s4460_s6, 4096, %s4626_s10, [#allocation18], %s4363_s23, %s4363_s23, %s4364_s9  }
 0x11b   :  { %s220_s0 = sshll.u32 %s4377_s11, 4  ;;  %s4378_s15 = smov [#allocation25]   ;;  %s221_s0 = int_to_ptr.vmem [resolvable:$true] %s220_s0 }
 0x11c   :  { %s242_s3 = sshll.u32 %s4378_s15, 4  ;;  %s4647_s3 = int_to_ptr.vmem [resolvable:$true] %s242_s3 }
 0x11f   :  { %s4154_s16 = scalar_lea.hbm %s4761_s24, 4096 }
 0x120   :  { %p4155_p0 = scmp.ne.s32.totalorder %s4761_s24, %s4154_s16  ;;  %p4158_p1 = scmp.lt.u32.totalorder %s4154_s16, %s4761_s24 }
 0x122   :  { %p4160_p2 = pnand %p4158_p1, %p4155_p0 }
 0x124   :  { %4163 = shalt.err (!%p4160_p2)
}
 0x125   :  { %s4164_s4 = scalar_lea.vmem %s221_s0, 4096  ;;  %p4169_p4 = scmp.lt.s32.totalorder %s221_s0, %s221_s0 }
 0x126   :  { %p4165_p3 = scmp.ne.s32.totalorder %s221_s0, %s4164_s4  ;;  %p4170_p5 = scmp.lt.s32.totalorder %s4164_s4, %s4164_s4 }
 0x128   :  { %p4171_p6 = por %p4170_p5, %p4169_p4 }
 0x12a   :  { %p4172_p7 = pnand %p4171_p6, %p4165_p3 }
 0x12c   :  { %4175 = shalt.err (!%p4172_p7)
}
 0x12d   :  { %s4762_s6 = sld [smem:[#allocation51_spill]] }
 0x12e   :  { %226 = dma.hbm_to_vmem [thread:$0]  %s4761_s24, 4096, %s221_s0, [#allocation21], %s4363_s23, %s4363_s23, %s4364_s9  }
 0x133   :  { %s4176_s18 = scalar_lea.hbm %s4762_s6, 2048 }
 0x134   :  { %p4177_p8 = scmp.ne.s32.totalorder %s4762_s6, %s4176_s18  ;;  %p4180_p9 = scmp.lt.u32.totalorder %s4176_s18, %s4762_s6 }
 0x136   :  { %p4182_p10 = pnand %p4180_p9, %p4177_p8 }
 0x138   :  { %4185 = shalt.err (!%p4182_p10)
}
 0x139   :  { %s4186_s22 = scalar_lea.vmem %s4647_s3, 2048  ;;  %p4191_p12 = scmp.lt.s32.totalorder %s4647_s3, %s4647_s3 }
 0x13a   :  { %p4187_p11 = scmp.ne.s32.totalorder %s4647_s3, %s4186_s22  ;;  %p4192_p13 = scmp.lt.s32.totalorder %s4186_s22, %s4186_s22 }
 0x13c   :  { %p4193_p0 = por %p4192_p13, %p4191_p12 }
 0x13e   :  { %p4194_p1 = pnand %p4193_p0, %p4187_p11 }
 0x140   :  { %4197 = shalt.err (!%p4194_p1)
}
 0x141   :  { %s4379_s19 = smov 64   ;;  %s4763_s5 = sld [smem:[#allocation56_spill]] }
 0x142   :  { %s4380_s26 = smov 4   ;;  %s4381_s28 = smov [#allocation28]  }
 0x143   :  { %248 = dma.hbm_to_vmem [thread:$0]  %s4762_s6, 2048, %s4647_s3, [#allocation24], %s4379_s19, %s4379_s19, %s4380_s26  }
 0x144   :  { %s274_s1 = sshll.u32 %s4381_s28, 4  ;;  %s4382_s13 = smov [#allocation29]   ;;  %s275_s1 = int_to_ptr.vmem [resolvable:$true] %s274_s1 }
 0x145   :  { %s288_s30 = sshll.u32 %s4382_s13, 4  ;;  %s4668_s30 = int_to_ptr.vmem [resolvable:$true] %s288_s30 }
 0x147   :  { %s4198_s25 = scalar_lea.hbm %s4763_s5, 4096 }
 0x148   :  { %p4199_p2 = scmp.ne.s32.totalorder %s4763_s5, %s4198_s25  ;;  %p4202_p3 = scmp.lt.u32.totalorder %s4198_s25, %s4763_s5 }
 0x14a   :  { %p4204_p4 = pnand %p4202_p3, %p4199_p2 }
 0x14c   :  { %4207 = shalt.err (!%p4204_p4)
}
 0x14d   :  { %s4208_s2 = scalar_lea.vmem %s275_s1, 4096  ;;  %p4213_p6 = scmp.lt.s32.totalorder %s275_s1, %s275_s1 }
 0x14e   :  { %p4209_p5 = scmp.ne.s32.totalorder %s275_s1, %s4208_s2  ;;  %p4214_p7 = scmp.lt.s32.totalorder %s4208_s2, %s4208_s2 }
 0x150   :  { %p4215_p8 = por %p4214_p7, %p4213_p6 }
 0x152   :  { %p4216_p9 = pnand %p4215_p8, %p4209_p5 }
 0x154   :  { %4219 = shalt.err (!%p4216_p9)
}
 0x155   :  { %s4764_s7 = sld [smem:[#allocation58_spill]] }
 0x156   :  { %280 = dma.hbm_to_vmem [thread:$0]  %s4763_s5, 4096, %s275_s1, [#allocation27], %s4363_s23, %s4363_s23, %s4364_s9  }
 0x15b   :  { %s4220_s10 = scalar_lea.hbm %s4764_s7, 2048 }
 0x15c   :  { %p4221_p10 = scmp.ne.s32.totalorder %s4764_s7, %s4220_s10  ;;  %p4224_p11 = scmp.lt.u32.totalorder %s4220_s10, %s4764_s7 }
 0x15e   :  { %p4226_p12 = pnand %p4224_p11, %p4221_p10 }
 0x160   :  { %4229 = shalt.err (!%p4226_p12)
}
 0x161   :  { %s4230_s12 = scalar_lea.vmem %s4668_s30, 2048  ;;  %p4235_p0 = scmp.lt.s32.totalorder %s4668_s30, %s4668_s30 }
 0x162   :  { %p4231_p13 = scmp.ne.s32.totalorder %s4668_s30, %s4230_s12  ;;  %p4236_p1 = scmp.lt.s32.totalorder %s4230_s12, %s4230_s12 }
 0x164   :  { %p4237_p2 = por %p4236_p1, %p4235_p0 }
 0x166   :  { %p4238_p3 = pnand %p4237_p2, %p4231_p13 }
 0x168   :  { %4241 = shalt.err (!%p4238_p3)
}
 0x169   :  { %294 = dma.hbm_to_vmem [thread:$0]  %s4764_s7, 2048, %s4668_s30, [#allocation30], %s4379_s19, %s4379_s19, %s4380_s26  }
 0x16a   :  { %4308 = dma.done.wait [#allocation3], 256  }
 0x16b   :  { %4309 = vsyncadd [#allocation3], 4294967040 }
 0x16c   :  { %4310 = dma.done.wait [#allocation6], 256  }
 0x16d   :  { %4311 = vsyncadd [#allocation6], 4294967040 }
 0x16e   :  { %4312 = dma.done.wait [#allocation9], 7552  }
 0x16f   :  { %4313 = vsyncadd [#allocation9], 4294959744 }
 0x170   :  { %4314 = dma.done.wait [#allocation12], 8192  }
 0x171   :  { %4315 = vsyncadd [#allocation12], 4294959104 }
 0x172   :  { %4316 = dma.done.wait [#allocation15], 1312  }
 0x173   :  { %4317 = vsyncadd [#allocation15], 4294965984 }
 0x174   :  { %4318 = dma.done.wait [#allocation18], 4128  }
 0x175   :  { %4319 = vsyncadd [#allocation18], 4294963168 }
 0x176   :  { %4320 = dma.done.wait [#allocation21], 4128  }
 0x177   :  { %4321 = vsyncadd [#allocation21], 4294963168 }
 0x178   :  { %4322 = dma.done.wait [#allocation24], 2080  }
 0x179   :  { %4323 = vsyncadd [#allocation24], 4294965216 }
 0x17a   :  { %4324 = dma.done.wait [#allocation27], 8192  }
 0x17b   :  { %4325 = vsyncadd [#allocation27], 4294959104 }
 0x17c   :  { %4326 = dma.done.wait [#allocation30], 2048  }
 0x17d   :  { %4327 = vsyncadd [#allocation30], 4294965248  ;;  %v3410_v0 = vld [vmem:[#allocation8 + $0x4] ss:$8 sps:$4 sm:$0xff]   ;;  %v3412_v1 = vld [vmem:[#allocation8] ss:$8 sps:$4 sm:$0xff]  }
 0x17e   :  { %541 = vmatprep.subr.bf16.mxu0 %v3410_v0  ;;  %v3413_v2 = vld [vmem:[#allocation8 + $0x14] ss:$8 sps:$4 sm:$0xff]   ;;  %v3415_v3 = vld [vmem:[#allocation8 + $0x10] ss:$8 sps:$4 sm:$0xff]   ;;  %v3416_v4 = vld [vmem:[#allocation8 + $0x24] ss:$8 sps:$4 sm:$0xff]  }
 0x17f   :  { %542 = vmatpush1.bf16.msra.mxu0 %v3412_v1  ;;  %v3418_v5 = vld [vmem:[#allocation8 + $0x20] ss:$8 sps:$4 sm:$0xff]   ;;  %v3419_v6 = vld [vmem:[#allocation8 + $0x34] ss:$8 sps:$4 sm:$0xff]   ;;  %v3421_v7 = vld [vmem:[#allocation8 + $0x30] ss:$8 sps:$4 sm:$0xff]  }
 0x180   :  { %543 = vmatprep.subr.bf16.mxu0 %v3413_v2  ;;  %v3422_v8 = vld [vmem:[#allocation8 + $0x44] ss:$8 sps:$4 sm:$0xff]   ;;  %v3424_v9 = vld [vmem:[#allocation8 + $0x40] ss:$8 sps:$4 sm:$0xff]   ;;  %v3425_v10 = vld [vmem:[#allocation8 + $0x54] ss:$8 sps:$4 sm:$0xff]  }
 0x181   :  { %v353_v11 = vld [vmem:[#allocation2 + $0x8] sm:$0xff]  ;;  %vm530_vm0 = vcmask 719872   ;;  %v3427_v12 = vld [vmem:[#allocation8 + $0x50] ss:$8 sps:$4 sm:$0xff]   ;;  %v3451_v14 = vld [vmem:[#allocation10 + $0x4] ss:$8 sps:$4 sm:$0xff]  }
 0x182   :  { %v355_v13 = vpack.c.bf16 %v353_v11, %v353_v11  ;;  %v3453_v15 = vld [vmem:[#allocation10] ss:$8 sps:$4 sm:$0xff]   ;;  %v3428_v16 = vld [vmem:[#allocation8 + $0x64] ss:$8 sps:$4 sm:$0xff]   ;;  %790 = vmatprep.subr.bf16.mxu1 %v3451_v14  ;;  %v3456_v18 = vld [vmem:[#allocation10 + $0x10] ss:$8 sps:$4 sm:$0xff]  }
 0x183   :  { %544 = vmatpush1.bf16.msra.mxu0 %v3415_v3  ;;  %v3454_v17 = vld [vmem:[#allocation10 + $0x14] ss:$8 sps:$4 sm:$0xff]   ;;  %791 = vmatpush1.bf16.msra.mxu1 %v3453_v15  ;;  %v3430_v19 = vld [vmem:[#allocation8 + $0x60] ss:$8 sps:$4 sm:$0xff]   ;;  %v3457_v20 = vld [vmem:[#allocation10 + $0x24] ss:$8 sps:$4 sm:$0xff]  }
 0x184   :  { %545 = vmatprep.subr.bf16.mxu0 %v3416_v4  ;;  %3031 = vmatprep.mubr.msk.bf16.mxu0 %vm530_vm0, %v355_v13  ;;  %v3431_v21 = vld [vmem:[#allocation8 + $0x74] ss:$8 sps:$4 sm:$0xff]   ;;  %v3459_v22 = vld [vmem:[#allocation10 + $0x20] ss:$8 sps:$4 sm:$0xff]   ;;  %v3434_v25 = vld [vmem:[#allocation8 + $0x84] ss:$8 sps:$4 sm:$0xff]  }
 0x185   :  { %792 = vmatprep.subr.bf16.mxu1 %v3454_v17  ;;  %v3433_v23 = vld [vmem:[#allocation8 + $0x70] ss:$8 sps:$4 sm:$0xff]   ;;  %v3460_v24 = vld [vmem:[#allocation10 + $0x34] ss:$8 sps:$4 sm:$0xff]   ;;  %v3436_v27 = vld [vmem:[#allocation8 + $0x80] ss:$8 sps:$4 sm:$0xff]  }
 0x186   :  { %v3462_v26 = vld [vmem:[#allocation10 + $0x30] ss:$8 sps:$4 sm:$0xff]   ;;  %v3463_v28 = vld [vmem:[#allocation10 + $0x44] ss:$8 sps:$4 sm:$0xff]   ;;  %v3465_v30 = vld [vmem:[#allocation10 + $0x40] ss:$8 sps:$4 sm:$0xff]  }
 0x187   :  { %546 = vmatpush1.bf16.msra.mxu0 %v3418_v5  ;;  %793 = vmatpush1.bf16.msra.mxu1 %v3456_v18  ;;  %v3437_v29 = vld [vmem:[#allocation8 + $0x94] ss:$8 sps:$4 sm:$0xff]   ;;  %v3439_v31 = vld [vmem:[#allocation8 + $0x90] ss:$8 sps:$4 sm:$0xff]   ;;  %v3440_v33 = vld [vmem:[#allocation8 + $0xa4] ss:$8 sps:$4 sm:$0xff]  }
 0x188   :  { %547 = vmatprep.subr.bf16.mxu0 %v3419_v6  ;;  %794 = vmatprep.subr.bf16.mxu1 %v3457_v20  ;;  %v3466_v32 = vld [vmem:[#allocation10 + $0x54] ss:$8 sps:$4 sm:$0xff]   ;;  %v3468_v34 = vld [vmem:[#allocation10 + $0x50] ss:$8 sps:$4 sm:$0xff]   ;;  %v3469_v36 = vld [vmem:[#allocation10 + $0x64] ss:$8 sps:$4 sm:$0xff]  }
 0x189   :  { %v3442_v35 = vld [vmem:[#allocation8 + $0xa0] ss:$8 sps:$4 sm:$0xff]   ;;  %v3443_v37 = vld [vmem:[#allocation8 + $0xb4] ss:$8 sps:$4 sm:$0xff]   ;;  %v3445_v39 = vld [vmem:[#allocation8 + $0xb0] ss:$8 sps:$4 sm:$0xff]  }
 0x18a   :  { %v3471_v38 = vld [vmem:[#allocation10 + $0x60] ss:$8 sps:$4 sm:$0xff]   ;;  %v3472_v40 = vld [vmem:[#allocation10 + $0x74] ss:$8 sps:$4 sm:$0xff]   ;;  %v3474_v43 = vld [vmem:[#allocation10 + $0x70] ss:$8 sps:$4 sm:$0xff]  }
 0x18b   :  { %548 = vmatpush1.bf16.msra.mxu0 %v3421_v7  ;;  %795 = vmatpush1.bf16.msra.mxu1 %v3459_v22  ;;  %v3446_v41 = vld [vmem:[#allocation8 + $0xc4] ss:$8 sps:$4 sm:$0xff]   ;;  %v382_v42 = vld [vmem:[#allocation8 + $0xd0] sm:$0xff]  ;;  %v3448_v44 = vld [vmem:[#allocation8 + $0xc0] ss:$8 sps:$4 sm:$0xff]   ;;  %vm534_vm1 = vcmask 1043456  }
 0x18c   :  { %549 = vmatprep.subr.bf16.mxu0 %v3422_v8  ;;  %796 = vmatprep.subr.bf16.mxu1 %v3460_v24  ;;  %v3475_v45 = vld [vmem:[#allocation10 + $0x84] ss:$8 sps:$4 sm:$0xff]   ;;  %v3029_v46 = vcombine.high %v382_v42, %v382_v42  ;;  %v3028_v47 = vcombine.low %v382_v42, %v382_v42  ;;  %v3477_v48 = vld [vmem:[#allocation10 + $0x80] ss:$8 sps:$4 sm:$0xff]   ;;  %v3478_v50 = vld [vmem:[#allocation10 + $0x94] ss:$8 sps:$4 sm:$0xff]  }
 0x18d   :  { %v352_v49 = vld [vmem:[#allocation2] sm:$0xff]  ;;  %v3480_v52 = vld [vmem:[#allocation10 + $0x90] ss:$8 sps:$4 sm:$0xff]   ;;  %v3484_v56 = vld [vmem:[#allocation10 + $0xb4] ss:$8 sps:$4 sm:$0xff]   ;;  %s4765_s23 = sld [smem:[#allocation47_spill]] }
 0x18e   :  { %v536_v51 = vsel %vm534_vm1, %v3028_v47, 0  ;;  %v3481_v53 = vld [vmem:[#allocation10 + $0xa4] ss:$8 sps:$4 sm:$0xff]   ;;  %v354_v54 = vpack.c.bf16 %v352_v49, %v352_v49  ;;  %v3483_v55 = vld [vmem:[#allocation10 + $0xa0] ss:$8 sps:$4 sm:$0xff]   ;;  %s4766_s9 = sld [smem:[#allocation48_spill]] }
 0x18f   :  { %550 = vmatpush1.bf16.msra.mxu0 %v3424_v9  ;;  %797 = vmatpush1.bf16.msra.mxu1 %v3462_v26  ;;  %v3486_v57 = vld [vmem:[#allocation10 + $0xb0] ss:$8 sps:$4 sm:$0xff]   ;;  %v3487_v58 = vld [vmem:[#allocation10 + $0xc4] ss:$8 sps:$4 sm:$0xff]   ;;  %v3489_v59 = vld [vmem:[#allocation10 + $0xc0] ss:$8 sps:$4 sm:$0xff]  }
 0x190   :  { %551 = vmatprep.subr.bf16.mxu0 %v3425_v10  ;;  %798 = vmatprep.subr.bf16.mxu1 %v3463_v28  ;;  %v3490_v60 = vld [vmem:[#allocation10 + $0xd4] ss:$8 sps:$4 sm:$0xff]   ;;  %v3492_v61 = vld [vmem:[#allocation10 + $0xd0] ss:$8 sps:$4 sm:$0xff]   ;;  %v3493_v62 = vld [vmem:[#allocation10 + $0xe4] ss:$8 sps:$4 sm:$0xff]  }
 0x191   :  { %v3495_v63 = vld [vmem:[#allocation10 + $0xe0] ss:$8 sps:$4 sm:$0xff]   ;;  %v3496_v0 = vld [vmem:[#allocation10 + $0xf4] ss:$8 sps:$4 sm:$0xff]   ;;  %v3498_v1 = vld [vmem:[#allocation10 + $0xf0] ss:$8 sps:$4 sm:$0xff]  }
 0x192   :  { %v3499_v2 = vld [vmem:[#allocation11] ss:$8 sps:$4 sm:$0xff]   ;;  %v3501_v3 = vld [vmem:[#allocation11 + $0x4] ss:$8 sps:$4 sm:$0xff]   ;;  %v3504_v4 = vld [vmem:[#allocation11 + $0x14] ss:$8 sps:$4 sm:$0xff]  }
 0x193   :  { %552 = vmatpush1.bf16.msra.mxu0 %v3427_v12  ;;  %799 = vmatpush1.bf16.msra.mxu1 %v3465_v30  ;;  %v3502_v5 = vld [vmem:[#allocation11 + $0x10] ss:$8 sps:$4 sm:$0xff]   ;;  %v3507_v6 = vld [vmem:[#allocation11 + $0x24] ss:$8 sps:$4 sm:$0xff]   ;;  %v3505_v7 = vld [vmem:[#allocation11 + $0x20] ss:$8 sps:$4 sm:$0xff]   ;;  %v385_v30 = vlaneseq }
 0x194   :  { %553 = vmatprep.subr.bf16.mxu0 %v3428_v16  ;;  %800 = vmatprep.subr.bf16.mxu1 %v3466_v32  ;;  %v3510_v8 = vld [vmem:[#allocation11 + $0x34] ss:$8 sps:$4 sm:$0xff]   ;;  %v3508_v9 = vld [vmem:[#allocation11 + $0x30] ss:$8 sps:$4 sm:$0xff]   ;;  %v3513_v10 = vld [vmem:[#allocation11 + $0x44] ss:$8 sps:$4 sm:$0xff]  }
 0x195   :  { %v3511_v11 = vld [vmem:[#allocation11 + $0x40] ss:$8 sps:$4 sm:$0xff]   ;;  %v3516_v12 = vld [vmem:[#allocation11 + $0x54] ss:$8 sps:$4 sm:$0xff]   ;;  %v3514_v13 = vld [vmem:[#allocation11 + $0x50] ss:$8 sps:$4 sm:$0xff]  }
 0x196   :  { %v3519_v14 = vld [vmem:[#allocation11 + $0x64] ss:$8 sps:$4 sm:$0xff]   ;;  %v3517_v15 = vld [vmem:[#allocation11 + $0x60] ss:$8 sps:$4 sm:$0xff]   ;;  %v3522_v16 = vld [vmem:[#allocation11 + $0x74] ss:$8 sps:$4 sm:$0xff]  }
 0x197   :  { %554 = vmatpush1.bf16.msra.mxu0 %v3430_v19  ;;  %801 = vmatpush1.bf16.msra.mxu1 %v3468_v34  ;;  %v3520_v17 = vld [vmem:[#allocation11 + $0x70] ss:$8 sps:$4 sm:$0xff]   ;;  %v3525_v18 = vld [vmem:[#allocation11 + $0x84] ss:$8 sps:$4 sm:$0xff]   ;;  %v3523_v19 = vld [vmem:[#allocation11 + $0x80] ss:$8 sps:$4 sm:$0xff]  }
 0x198   :  { %555 = vmatprep.subr.bf16.mxu0 %v3431_v21  ;;  %802 = vmatprep.subr.bf16.mxu1 %v3469_v36  ;;  %v3528_v20 = vld [vmem:[#allocation11 + $0x94] ss:$8 sps:$4 sm:$0xff]   ;;  %v3526_v21 = vld [vmem:[#allocation11 + $0x90] ss:$8 sps:$4 sm:$0xff]   ;;  %v3531_v22 = vld [vmem:[#allocation11 + $0xa4] ss:$8 sps:$4 sm:$0xff]  }
 0x199   :  { %v3534_v24 = vld [vmem:[#allocation11 + $0xb4] ss:$8 sps:$4 sm:$0xff]   ;;  %v3537_v26 = vld [vmem:[#allocation11 + $0xc4] ss:$8 sps:$4 sm:$0xff]   ;;  %vm1409_vm2 = vcmask 1045504   ;;  %s4767_s17 = sld [smem:[#allocation49_spill]] }
 0x19a   :  { %v3540_v28 = vld [vmem:[#allocation11 + $0xd4] ss:$8 sps:$4 sm:$0xff]   ;;  %v3543_v47 = vld [vmem:[#allocation11 + $0xe4] ss:$8 sps:$4 sm:$0xff]   ;;  %vm1405_vm3 = vcmask 621568   ;;  %s4768_s14 = sld [smem:[#allocation53_spill]] }
 0x19b   :  { %556 = vmatpush1.bf16.msra.mxu0 %v3433_v23  ;;  %803 = vmatpush1.bf16.msra.mxu1 %v3471_v38  ;;  %v3529_v23 = vld [vmem:[#allocation11 + $0xa0] ss:$8 sps:$4 sm:$0xff]   ;;  %v3546_v49 = vld [vmem:[#allocation11 + $0xf4] ss:$8 sps:$4 sm:$0xff]   ;;  %vm2198_vm4 = vcmask 523264   ;;  %s4769_s27 = sld [smem:[#allocation52_spill]] }
 0x19c   :  { %557 = vmatprep.subr.bf16.mxu0 %v3434_v25  ;;  %804 = vmatprep.subr.bf16.mxu1 %v3472_v40  ;;  %v3532_v25 = vld [vmem:[#allocation11 + $0xb0] ss:$8 sps:$4 sm:$0xff]   ;;  %s4770_s24 = sld [smem:[#allocation54_spill]]  ;;  %s4771_s11 = sld [smem:[#allocation55_spill]] }
 0x19d   :  { %s4772_s0 = sld [smem:[#allocation57_spill]]  ;;  %s4384_s15 = smov [#allocation32]  }
 0x19e   :  { %s2938_s3 = sshll.u32 %s4384_s15, 4  ;;  %s4385_s16 = smov [#allocation31]   ;;  %s2939_s3 = int_to_ptr.vmem [resolvable:$true] %s2938_s3 }
 0x19f   :  { %558 = vmatpush1.bf16.msra.mxu0 %v3436_v27  ;;  %805 = vmatpush1.bf16.msra.mxu1 %v3474_v43  ;;  %v3535_v27 = vld [vmem:[#allocation11 + $0xc0] ss:$8 sps:$4 sm:$0xff]   ;;  %s2928_s4 = sshll.u32 %s4385_s16, 4  ;;  %s4242_s6 = scalar_lea.vmem %s2939_s3, 128  ;;  %s2929_s4 = int_to_ptr.vmem [resolvable:$true] %s2928_s4 }
 0x1a0   :  { %559 = vmatprep.subr.bf16.mxu0 %v3437_v29  ;;  %806 = vmatprep.subr.bf16.mxu1 %v3475_v45  ;;  %v3538_v29 = vld [vmem:[#allocation11 + $0xd0] ss:$8 sps:$4 sm:$0xff]   ;;  %p4243_p4 = scmp.ne.s32.totalorder %s2939_s3, %s4242_s6  ;;  %p4247_p5 = scmp.lt.s32.totalorder %s2939_s3, %s2939_s3 }
 0x1a1   :  { %p4248_p6 = scmp.lt.s32.totalorder %s4242_s6, %s4242_s6 }
 0x1a3   :  { %560 = vmatpush1.bf16.msra.mxu0 %v3439_v31  ;;  %807 = vmatpush1.bf16.msra.mxu1 %v3477_v48  ;;  %v386_v31 = vshrl.u32 %v385_v30, 7  ;;  %v3541_v48 = vld [vmem:[#allocation11 + $0xe0] ss:$8 sps:$4 sm:$0xff]   ;;  %p4249_p7 = por %p4248_p6, %p4247_p5 }
 0x1a4   :  { %561 = vmatprep.subr.bf16.mxu0 %v3440_v33  ;;  %808 = vmatprep.subr.bf16.mxu1 %v3478_v50  ;;  %v383_v33 = vld [vmem:[%s4765_s23] sm:$0x3]  ;;  %v3544_v50 = vld [vmem:[#allocation11 + $0xf0] ss:$8 sps:$4 sm:$0xff]  }
 0x1a5   :  { %v4689_v32 = vsub.s32 0, %v386_v31  ;;  %v4692_v34 = vsub.s32 1, %v386_v31  ;;  %v3552_v30 = vld [vmem:[#allocation16 + $0x14] ss:$8 sps:$4 sm:$0xff]   ;;  %v3550_v31 = vld [vmem:[#allocation16 + $0x10] ss:$8 sps:$4 sm:$0xff]   ;;  %p4250_p8 = pnand %p4249_p7, %p4243_p4 }
 0x1a7   :  { %562 = vmatpush1.bf16.msra.mxu0 %v3442_v35  ;;  %809 = vmatpush1.bf16.msra.mxu1 %v3480_v52  ;;  %v388_v35 = vrot.slane %v383_v33, %v4689_v32  ;;  %v392_v36 = vrot.slane %v383_v33, %v4692_v34  ;;  %v3562_v52 = vld [vmem:[#allocation13] ss:$8 sps:$4 sm:$0xff]   ;;  %v4383_v33 = vmov 0  }
 0x1a8   :  { %563 = vmatprep.subr.bf16.mxu0 %v3443_v37  ;;  %810 = vmatprep.subr.bf16.mxu1 %v3481_v53  ;;  %v3564_v53 = vld [vmem:[#allocation13 + $0x4] ss:$8 sps:$4 sm:$0xff]  }
 0x1ab   :  { %564 = vmatpush1.bf16.msra.mxu0 %v3445_v39  ;;  %811 = vmatpush1.bf16.msra.mxu1 %v3483_v55  ;;  %v3565_v55 = vld [vmem:[#allocation13 + $0x10] ss:$8 sps:$4 sm:$0xff]  }
 0x1ac   :  { %565 = vmatprep.subr.bf16.mxu0 %v3446_v41  ;;  %812 = vmatprep.subr.bf16.mxu1 %v3484_v56  ;;  %v3570_v56 = vld [vmem:[#allocation13 + $0x24] ss:$8 sps:$4 sm:$0xff]  }
 0x1af   :  { %566 = vmatpush1.bf16.msra.mxu0 %v3448_v44  ;;  %813 = vmatpush1.bf16.msra.mxu1 %v3486_v57  ;;  %v3568_v57 = vld [vmem:[#allocation13 + $0x20] ss:$8 sps:$4 sm:$0xff]  }
 0x1b0   :  { %3030 = vmatprep.subr.msk.bf16.mxu0 %vm534_vm1, %v3029_v46  ;;  %814 = vmatprep.subr.bf16.mxu1 %v3487_v58  ;;  %v3573_v58 = vld [vmem:[#allocation13 + $0x34] ss:$8 sps:$4 sm:$0xff]  }
 0x1b3   :  { %568 = vmatpush1.bf16.msra.mxu0 %v536_v51  ;;  %815 = vmatpush1.bf16.msra.mxu1 %v3489_v59  ;;  %v3549_v51 = vld [vmem:[#allocation16 + $0x4] ss:$8 sps:$4 sm:$0xff]  }
 0x1b4   :  { %816 = vmatprep.subr.bf16.mxu1 %v3490_v60  ;;  %1039 = vmatprep.subr.bf16.mxu0 %v3501_v3  ;;  %v3571_v59 = vld [vmem:[#allocation13 + $0x30] ss:$8 sps:$4 sm:$0xff]   ;;  %v3576_v60 = vld [vmem:[#allocation13 + $0x44] ss:$8 sps:$4 sm:$0xff]  }
 0x1b5   :  { %v3583_v3 = vld [vmem:[#allocation13 + $0x70] ss:$8 sps:$4 sm:$0xff]  }
 0x1b6   :  { %574 = vmatmul.mubr.bf16.vlgmr.msra.gmra.mrb[0].mxu0 %v354_v54  ;;  %v3567_v54 = vld [vmem:[#allocation13 + $0x14] ss:$8 sps:$4 sm:$0xff]  }
 0x1b7   :  { %817 = vmatpush1.bf16.msra.mxu1 %v3492_v61  ;;  %1040 = vmatpush1.bf16.msra.mxu0 %v3499_v2  ;;  %v3574_v61 = vld [vmem:[#allocation13 + $0x40] ss:$8 sps:$4 sm:$0xff]   ;;  %v3585_v2 = vld [vmem:[#allocation13 + $0x74] ss:$8 sps:$4 sm:$0xff]  }
 0x1b8   :  { %818 = vmatprep.subr.bf16.mxu1 %v3493_v62  ;;  %1041 = vmatprep.subr.bf16.mxu0 %v3504_v4  ;;  %v3579_v62 = vld [vmem:[#allocation13 + $0x54] ss:$8 sps:$4 sm:$0xff]   ;;  %v3588_v4 = vld [vmem:[#allocation13 + $0x84] ss:$8 sps:$4 sm:$0xff]  }
 0x1bb   :  { %819 = vmatpush1.bf16.msra.mxu1 %v3495_v63  ;;  %1042 = vmatpush1.bf16.msra.mxu0 %v3502_v5  ;;  %v3577_v63 = vld [vmem:[#allocation13 + $0x50] ss:$8 sps:$4 sm:$0xff]   ;;  %v3586_v5 = vld [vmem:[#allocation13 + $0x80] ss:$8 sps:$4 sm:$0xff]  }
 0x1bc   :  { %820 = vmatprep.subr.bf16.mxu1 %v3496_v0  ;;  %1043 = vmatprep.subr.bf16.mxu0 %v3507_v6  ;;  %v3582_v0 = vld [vmem:[#allocation13 + $0x64] ss:$8 sps:$4 sm:$0xff]   ;;  %v3591_v6 = vld [vmem:[#allocation13 + $0x94] ss:$8 sps:$4 sm:$0xff]  }
 0x1bf   :  { %821 = vmatpush1.bf16.msra.mxu1 %v3498_v1  ;;  %1044 = vmatpush1.bf16.msra.mxu0 %v3505_v7  ;;  %v3580_v1 = vld [vmem:[#allocation13 + $0x60] ss:$8 sps:$4 sm:$0xff]   ;;  %v3589_v7 = vld [vmem:[#allocation13 + $0x90] ss:$8 sps:$4 sm:$0xff]  }
 0x1c0   :  { %1045 = vmatprep.subr.bf16.mxu0 %v3510_v8  ;;  %1288 = vmatprep.subr.bf16.mxu1 %v3564_v53  ;;  %v3594_v8 = vld [vmem:[#allocation13 + $0xa4] ss:$8 sps:$4 sm:$0xff]  }
 0x1c3   :  { %1046 = vmatpush1.bf16.msra.mxu0 %v3508_v9  ;;  %v3592_v9 = vld [vmem:[#allocation13 + $0xa0] ss:$8 sps:$4 sm:$0xff]  }
 0x1c4   :  { %1047 = vmatprep.subr.bf16.mxu0 %v3513_v10  ;;  %v3597_v10 = vld [vmem:[#allocation13 + $0xb4] ss:$8 sps:$4 sm:$0xff]  }
 0x1c7   :  { %1048 = vmatpush1.bf16.msra.mxu0 %v3511_v11  ;;  %v3595_v11 = vld [vmem:[#allocation13 + $0xb0] ss:$8 sps:$4 sm:$0xff]  }
 0x1c8   :  { %1049 = vmatprep.subr.bf16.mxu0 %v3516_v12  ;;  %v3600_v12 = vld [vmem:[#allocation13 + $0xc4] ss:$8 sps:$4 sm:$0xff]  }
 0x1cb   :  { %1050 = vmatpush1.bf16.msra.mxu0 %v3514_v13  ;;  %v3598_v13 = vld [vmem:[#allocation13 + $0xc0] ss:$8 sps:$4 sm:$0xff]  }
 0x1cc   :  { %1051 = vmatprep.subr.bf16.mxu0 %v3519_v14  ;;  %v3603_v14 = vld [vmem:[#allocation13 + $0xd4] ss:$8 sps:$4 sm:$0xff]  }
 0x1cf   :  { %1052 = vmatpush1.bf16.msra.mxu0 %v3517_v15  ;;  %v3601_v15 = vld [vmem:[#allocation13 + $0xd0] ss:$8 sps:$4 sm:$0xff]  }
 0x1d0   :  { %1053 = vmatprep.subr.bf16.mxu0 %v3522_v16  ;;  %v618_v16 = vld [vmem:[%s4766_s9] sm:$0x3] }
 0x1d3   :  { %1054 = vmatpush1.bf16.msra.mxu0 %v3520_v17  ;;  %v623_v17 = vrot.slane %v618_v16, %v4689_v32 }
 0x1d4   :  { %1055 = vmatprep.subr.bf16.mxu0 %v3525_v18  ;;  %v627_v18 = vrot.slane %v618_v16, %v4692_v34  ;;  %v3625_v16 = vld [vmem:[#allocation19 + $0x50] ss:$8 sps:$4 sm:$0xff]  }
 0x1d7   :  { %1056 = vmatpush1.bf16.msra.mxu0 %v3523_v19 }
 0x1d8   :  { %1057 = vmatprep.subr.bf16.mxu0 %v3528_v20 }
 0x1db   :  { %1058 = vmatpush1.bf16.msra.mxu0 %v3526_v21 }
 0x1dc   :  { %1059 = vmatprep.subr.bf16.mxu0 %v3531_v22 }
 0x1df   :  { %1060 = vmatpush1.bf16.msra.mxu0 %v3529_v23 }
 0x1e0   :  { %1061 = vmatprep.subr.bf16.mxu0 %v3534_v24 }
 0x1e3   :  { %1062 = vmatpush1.bf16.msra.mxu0 %v3532_v25 }
 0x1e4   :  { %1063 = vmatprep.subr.bf16.mxu0 %v3537_v26 }
 0x1e7   :  { %1064 = vmatpush1.bf16.msra.mxu0 %v3535_v27 }
 0x1e8   :  { %1065 = vmatprep.subr.bf16.mxu0 %v3540_v28  ;;  %v3547_v28 = vld [vmem:[#allocation16] ss:$8 sps:$4 sm:$0xff]  }
 0x1eb   :  { %1066 = vmatpush1.bf16.msra.mxu0 %v3538_v29 }
 0x1ec   :  { %1067 = vmatprep.subr.bf16.mxu0 %v3543_v47  ;;  %v3607_v47 = vld [vmem:[#allocation13 + $0xf0] ss:$8 sps:$4 sm:$0xff]  }
 0x1ef   :  { %1068 = vmatpush1.bf16.msra.mxu0 %v3541_v48  ;;  %v3612_v48 = vld [vmem:[#allocation19 + $0x4] ss:$8 sps:$4 sm:$0xff]  }
 0x1f0   :  { %1069 = vmatprep.subr.bf16.mxu0 %v3546_v49  ;;  %v867_v49 = vld [vmem:[%s4767_s17] sm:$0x3] }
 0x1f3   :  { %1070 = vmatpush1.bf16.msra.mxu0 %v3544_v50  ;;  %v872_v50 = vrot.slane %v867_v49, %v4689_v32 }
 0x1f4   :  { %1416 = vmatprep.subr.bf16.mxu0 %v3549_v51  ;;  %v876_v51 = vrot.slane %v867_v49, %v4692_v34  ;;  %v3666_v49 = vld [vmem:[#allocation22 + $0x24] ss:$8 sps:$4 sm:$0xff]  }
 0x289   :  { %v575_v37 = vpop.f32.mrb[0].mxu0 }
 0x28a   :  { %v576_v38 = vadd.f32 %v575_v37, %v388_v35  ;;  %v577_v39 = vpop.f32.mrb[1].mxu0  ;;  %v3555_v35 = vld [vmem:[#allocation16 + $0x24] ss:$8 sps:$4 sm:$0xff]   ;;  %v3558_v37 = vld [vmem:[#allocation16 + $0x34] ss:$8 sps:$4 sm:$0xff]  }
 0x28b   :  { %v578_v40 = vadd.f32 %v577_v39, %v392_v36  ;;  %v579_v41 = vpop.f32.mrb[2].mxu0  ;;  %v3553_v36 = vld [vmem:[#allocation16 + $0x20] ss:$8 sps:$4 sm:$0xff]   ;;  %v3559_v39 = vld [vmem:[#allocation16 + $0x44] ss:$8 sps:$4 sm:$0x3f]  }
 0x28c   :  { %v582_v42 = vmax.f32 %v576_v38, 0.0  ;;  %v580_v43 = vpop.f32.mrb[3].mxu0  ;;  %v3556_v38 = vld [vmem:[#allocation16 + $0x30] ss:$8 sps:$4 sm:$0xff]  }
 0x28d   :  { %v583_v44 = vmax.f32 %v578_v40, 0.0  ;;  %v3561_v40 = vld [vmem:[#allocation16 + $0x40] ss:$8 sps:$4 sm:$0x3f]   ;;  %v1333_v41 = vld [vmem:[#allocation5] sm:$0xff] }
 0x28e   :  { %v584_v46 = vpack.c.bf16 %v582_v42, %v582_v42  ;;  %v1411_v42 = vsel %vm1409_vm2, %v3561_v40, 0  ;;  %v1334_v43 = vpack.c.bf16 %v1333_v41, %v1333_v41  ;;  %v3657_v41 = vld [vmem:[#allocation19 + $0xf4] ss:$8 sps:$4 sm:$0xff]  }
 0x28f   :  { %v585_v45 = vpack.c.bf16 %v583_v44, %v583_v44  ;;  %v3606_v44 = vld [vmem:[#allocation13 + $0xe4] ss:$8 sps:$4 sm:$0xff]  }
 0x291   :  { %822 = vmatprep.mubr.bf16.mxu1 %v585_v45  ;;  %v3604_v45 = vld [vmem:[#allocation13 + $0xe0] ss:$8 sps:$4 sm:$0xff]  }
 0x292   :  { %823 = vmatmul.mubr.bf16.vlgmr.msra.gmra.mrb[0].mxu1 %v584_v46  ;;  %v3609_v46 = vld [vmem:[#allocation13 + $0xf4] ss:$8 sps:$4 sm:$0xff]  }
 0x293   :  { %1289 = vmatpush1.bf16.msra.mxu1 %v3562_v52 }
 0x294   :  { %1290 = vmatprep.subr.bf16.mxu1 %v3567_v54 }
 0x297   :  { %1291 = vmatpush1.bf16.msra.mxu1 %v3565_v55 }
 0x298   :  { %1292 = vmatprep.subr.bf16.mxu1 %v3570_v56 }
 0x29b   :  { %1293 = vmatpush1.bf16.msra.mxu1 %v3568_v57 }
 0x29c   :  { %1294 = vmatprep.subr.bf16.mxu1 %v3573_v58 }
 0x29f   :  { %1295 = vmatpush1.bf16.msra.mxu1 %v3571_v59 }
 0x2a0   :  { %1296 = vmatprep.subr.bf16.mxu1 %v3576_v60 }
 0x2a3   :  { %1297 = vmatpush1.bf16.msra.mxu1 %v3574_v61  ;;  %v3610_v61 = vld [vmem:[#allocation19] ss:$8 sps:$4 sm:$0xff]  }
 0x2a4   :  { %1298 = vmatprep.subr.bf16.mxu1 %v3579_v62 }
 0x2a7   :  { %1299 = vmatpush1.bf16.msra.mxu1 %v3577_v63  ;;  %v3615_v63 = vld [vmem:[#allocation19 + $0x14] ss:$8 sps:$4 sm:$0xff]  }
 0x2a8   :  { %1300 = vmatprep.subr.bf16.mxu1 %v3582_v0  ;;  %v3613_v0 = vld [vmem:[#allocation19 + $0x10] ss:$8 sps:$4 sm:$0xff]  }
 0x2ab   :  { %1301 = vmatpush1.bf16.msra.mxu1 %v3580_v1  ;;  %v3618_v1 = vld [vmem:[#allocation19 + $0x24] ss:$8 sps:$4 sm:$0xff]  }
 0x2ac   :  { %1302 = vmatprep.subr.bf16.mxu1 %v3585_v2  ;;  %v3616_v2 = vld [vmem:[#allocation19 + $0x20] ss:$8 sps:$4 sm:$0xff]  }
 0x2af   :  { %1303 = vmatpush1.bf16.msra.mxu1 %v3583_v3  ;;  %v3621_v3 = vld [vmem:[#allocation19 + $0x34] ss:$8 sps:$4 sm:$0xff]  }
 0x2b0   :  { %1304 = vmatprep.subr.bf16.mxu1 %v3588_v4  ;;  %v1345_v4 = vld [vmem:[#allocation17] sm:$0x3] }
 0x2b3   :  { %1305 = vmatpush1.bf16.msra.mxu1 %v3586_v5  ;;  %v3619_v5 = vld [vmem:[#allocation19 + $0x30] ss:$8 sps:$4 sm:$0xff]  }
 0x2b4   :  { %1306 = vmatprep.subr.bf16.mxu1 %v3591_v6  ;;  %v1354_v6 = vrot.slane %v1345_v4, %v4692_v34 }
 0x2b7   :  { %1307 = vmatpush1.bf16.msra.mxu1 %v3589_v7  ;;  %v3624_v7 = vld [vmem:[#allocation19 + $0x44] ss:$8 sps:$4 sm:$0xff]  }
 0x2b8   :  { %1308 = vmatprep.subr.bf16.mxu1 %v3594_v8 }
 0x2bb   :  { %1309 = vmatpush1.bf16.msra.mxu1 %v3592_v9 }
 0x2bc   :  { %1310 = vmatprep.subr.bf16.mxu1 %v3597_v10  ;;  %v3622_v10 = vld [vmem:[#allocation19 + $0x40] ss:$8 sps:$4 sm:$0xff]  }
 0x2bf   :  { %1311 = vmatpush1.bf16.msra.mxu1 %v3595_v11 }
 0x2c0   :  { %1312 = vmatprep.subr.bf16.mxu1 %v3600_v12 }
 0x2c3   :  { %1313 = vmatpush1.bf16.msra.mxu1 %v3598_v13  ;;  %v3627_v13 = vld [vmem:[#allocation19 + $0x54] ss:$8 sps:$4 sm:$0xff]  }
 0x2c4   :  { %1314 = vmatprep.subr.bf16.mxu1 %v3603_v14 }
 0x2c7   :  { %1315 = vmatpush1.bf16.msra.mxu1 %v3601_v15 }
 0x2c8   :  { %1316 = vmatprep.subr.bf16.mxu1 %v3606_v44 }
 0x2cb   :  { %1317 = vmatpush1.bf16.msra.mxu1 %v3604_v45  ;;  %v3658_v45 = vld [vmem:[#allocation22] ss:$8 sps:$4 sm:$0xff]  }
 0x2cc   :  { %1318 = vmatprep.subr.bf16.mxu1 %v3609_v46  ;;  %v3660_v46 = vld [vmem:[#allocation22 + $0x4] ss:$8 sps:$4 sm:$0xff]  }
 0x2cf   :  { %1319 = vmatpush1.bf16.msra.mxu1 %v3607_v47  ;;  %v3663_v47 = vld [vmem:[#allocation22 + $0x14] ss:$8 sps:$4 sm:$0xff]  }
 0x2d0   :  { %1665 = vmatprep.subr.bf16.mxu1 %v3612_v48  ;;  %v3661_v48 = vld [vmem:[#allocation22 + $0x10] ss:$8 sps:$4 sm:$0xff]  }
 0x365   :  { %v824_v19 = vpop.f32.mrb[0].mxu1 }
 0x366   :  { %v825_v20 = vadd.f32 %v824_v19, %v623_v17  ;;  %v826_v21 = vpop.f32.mrb[1].mxu1  ;;  %v3628_v19 = vld [vmem:[#allocation19 + $0x60] ss:$8 sps:$4 sm:$0xff]  }
 0x367   :  { %v827_v22 = vadd.f32 %v826_v21, %v627_v18  ;;  %v828_v23 = vpop.f32.mrb[2].mxu1  ;;  %v3630_v18 = vld [vmem:[#allocation19 + $0x64] ss:$8 sps:$4 sm:$0xff]   ;;  %v3631_v21 = vld [vmem:[#allocation19 + $0x70] ss:$8 sps:$4 sm:$0xff]  }
 0x368   :  { %v831_v24 = vmax.f32 %v825_v20, 0.0  ;;  %v829_v25 = vpop.f32.mrb[3].mxu1  ;;  %v3633_v20 = vld [vmem:[#allocation19 + $0x74] ss:$8 sps:$4 sm:$0xff]   ;;  %v3634_v23 = vld [vmem:[#allocation19 + $0x80] ss:$8 sps:$4 sm:$0xff]  }
 0x369   :  { %v832_v26 = vmax.f32 %v827_v22, 0.0  ;;  %v3636_v22 = vld [vmem:[#allocation19 + $0x84] ss:$8 sps:$4 sm:$0xff]   ;;  %v3637_v25 = vld [vmem:[#allocation19 + $0x90] ss:$8 sps:$4 sm:$0xff]  }
 0x36a   :  { %v833_v29 = vpack.c.bf16 %v831_v24, %v831_v24  ;;  %v3639_v24 = vld [vmem:[#allocation19 + $0x94] ss:$8 sps:$4 sm:$0xff]  }
 0x36b   :  { %v834_v27 = vpack.c.bf16 %v832_v26, %v832_v26  ;;  %v3642_v26 = vld [vmem:[#allocation19 + $0xa4] ss:$8 sps:$4 sm:$0xff]  }
 0x36d   :  { %1071 = vmatprep.mubr.bf16.mxu0 %v834_v27  ;;  %v3640_v27 = vld [vmem:[#allocation19 + $0xa0] ss:$8 sps:$4 sm:$0xff]  }
 0x36e   :  { %1072 = vmatmul.mubr.bf16.vlgmr.msra.gmra.mrb[4].mxu0 %v833_v29  ;;  %v3643_v29 = vld [vmem:[#allocation19 + $0xb0] ss:$8 sps:$4 sm:$0xff]  }
 0x36f   :  { %1417 = vmatpush1.bf16.msra.mxu0 %v3547_v28  ;;  %1448 = vmatprep.mubr.bf16.mxu0 %v4383_v33  ;;  %v3645_v28 = vld [vmem:[#allocation19 + $0xb4] ss:$8 sps:$4 sm:$0xff]  }
 0x370   :  { %1418 = vmatprep.subr.bf16.mxu0 %v3552_v30  ;;  %v3648_v30 = vld [vmem:[#allocation19 + $0xc4] ss:$8 sps:$4 sm:$0xff]  }
 0x373   :  { %1419 = vmatpush1.bf16.msra.mxu0 %v3550_v31  ;;  %v3646_v31 = vld [vmem:[#allocation19 + $0xc0] ss:$8 sps:$4 sm:$0xff]  }
 0x374   :  { %1420 = vmatprep.subr.bf16.mxu0 %v3555_v35  ;;  %v3651_v35 = vld [vmem:[#allocation19 + $0xd4] ss:$8 sps:$4 sm:$0xff]  }
 0x377   :  { %1421 = vmatpush1.bf16.msra.mxu0 %v3553_v36  ;;  %v3649_v36 = vld [vmem:[#allocation19 + $0xd0] ss:$8 sps:$4 sm:$0xff]  }
 0x378   :  { %1422 = vmatprep.subr.bf16.mxu0 %v3558_v37  ;;  %v1350_v37 = vrot.slane %v1345_v4, %v4689_v32  ;;  %v3691_v4 = vld [vmem:[#allocation22 + $0xb0] ss:$8 sps:$4 sm:$0xff]  }
 0x37b   :  { %1423 = vmatpush1.bf16.msra.mxu0 %v3556_v38  ;;  %v3654_v38 = vld [vmem:[#allocation19 + $0xe4] ss:$8 sps:$4 sm:$0xff]  }
 0x37c   :  { %3138 = vmatprep.subr.msk.bf16.mxu0 %vm1409_vm2, %v3559_v39  ;;  %v3652_v39 = vld [vmem:[#allocation19 + $0xe0] ss:$8 sps:$4 sm:$0xff]  }
 0x37f   :  { %1425 = vmatpush1.bf16.msra.mxu0 %v1411_v42  ;;  %v3655_v42 = vld [vmem:[#allocation19 + $0xf0] ss:$8 sps:$4 sm:$0xff]  }
 0x380   :  { %1914 = vmatprep.subr.bf16.mxu0 %v3660_v46 }
 0x382   :  { %3139 = vmatmul.mubr.msk.bf16.vlgmr.msra.gmra.mrb[8].mxu0 %vm1405_vm3, %v1334_v43 }
 0x383   :  { %1915 = vmatpush1.bf16.msra.mxu0 %v3658_v45 }
 0x384   :  { %1916 = vmatprep.subr.bf16.mxu0 %v3663_v47 }
 0x387   :  { %1917 = vmatpush1.bf16.msra.mxu0 %v3661_v48 }
 0x388   :  { %1918 = vmatprep.subr.bf16.mxu0 %v3666_v49 }
 0x441   :  { %v1073_v52 = vpop.f32.mrb[4].mxu0 }
 0x442   :  { %v1074_v53 = vadd.f32 %v1073_v52, %v872_v50  ;;  %v1075_v54 = vpop.f32.mrb[5].mxu0  ;;  %v3664_v50 = vld [vmem:[#allocation22 + $0x20] ss:$8 sps:$4 sm:$0xff]   ;;  %v3667_v52 = vld [vmem:[#allocation22 + $0x30] ss:$8 sps:$4 sm:$0xff]  }
 0x443   :  { %v1076_v55 = vadd.f32 %v1075_v54, %v876_v51  ;;  %v1077_v56 = vpop.f32.mrb[6].mxu0  ;;  %v3669_v51 = vld [vmem:[#allocation22 + $0x34] ss:$8 sps:$4 sm:$0xff]   ;;  %1919 = vmatpush1.bf16.msra.mxu0 %v3664_v50  ;;  %v3670_v54 = vld [vmem:[#allocation22 + $0x40] ss:$8 sps:$4 sm:$0xff]  }
 0x444   :  { %v1080_v57 = vmax.f32 %v1074_v53, 0.0  ;;  %v1078_v58 = vpop.f32.mrb[7].mxu0  ;;  %1920 = vmatprep.subr.bf16.mxu0 %v3669_v51  ;;  %v3672_v53 = vld [vmem:[#allocation22 + $0x44] ss:$8 sps:$4 sm:$0xff]   ;;  %v3673_v56 = vld [vmem:[#allocation22 + $0x50] ss:$8 sps:$4 sm:$0xff]  }
 0x445   :  { %v1081_v59 = vmax.f32 %v1076_v55, 0.0  ;;  %v3675_v55 = vld [vmem:[#allocation22 + $0x54] ss:$8 sps:$4 sm:$0xff]   ;;  %v3676_v58 = vld [vmem:[#allocation22 + $0x60] ss:$8 sps:$4 sm:$0xff]  }
 0x446   :  { %v1082_v62 = vpack.c.bf16 %v1080_v57, %v1080_v57  ;;  %v3678_v57 = vld [vmem:[#allocation22 + $0x64] ss:$8 sps:$4 sm:$0xff]  }
 0x447   :  { %v1083_v60 = vpack.c.bf16 %v1081_v59, %v1081_v59  ;;  %1921 = vmatpush1.bf16.msra.mxu0 %v3667_v52  ;;  %v3681_v59 = vld [vmem:[#allocation22 + $0x74] ss:$8 sps:$4 sm:$0xff]  }
 0x448   :  { %1922 = vmatprep.subr.bf16.mxu0 %v3672_v53  ;;  %v3718_v52 = vld [vmem:[#allocation25 + $0x70] sm:$0xff]  }
 0x449   :  { %1320 = vmatprep.mubr.bf16.mxu1 %v1083_v60  ;;  %v3679_v60 = vld [vmem:[#allocation22 + $0x70] ss:$8 sps:$4 sm:$0xff]  }
 0x44a   :  { %1321 = vmatmul.mubr.bf16.vlgmr.msra.gmra.mrb[4].mxu1 %v1082_v62  ;;  %v3682_v62 = vld [vmem:[#allocation22 + $0x80] ss:$8 sps:$4 sm:$0xff]   ;;  %v3719_v53 = vld [vmem:[#allocation25 + $0x30] sm:$0xff]  }
 0x44b   :  { %1666 = vmatpush1.bf16.msra.mxu1 %v3610_v61  ;;  %1923 = vmatpush1.bf16.msra.mxu0 %v3670_v54  ;;  %v3684_v61 = vld [vmem:[#allocation22 + $0x84] ss:$8 sps:$4 sm:$0xff]   ;;  %v3720_v54 = vld [vmem:[#allocation25 + $0x78] sm:$0xff]  }
 0x44c   :  { %1667 = vmatprep.subr.bf16.mxu1 %v3615_v63  ;;  %1924 = vmatprep.subr.bf16.mxu0 %v3675_v55  ;;  %v3687_v63 = vld [vmem:[#allocation22 + $0x94] ss:$8 sps:$4 sm:$0xff]  }
 0x44d   :  { %v3721_v55 = vld [vmem:[#allocation25 + $0x38] sm:$0xff]  }
 0x44f   :  { %1668 = vmatpush1.bf16.msra.mxu1 %v3613_v0  ;;  %1925 = vmatpush1.bf16.msra.mxu0 %v3673_v56  ;;  %v3685_v0 = vld [vmem:[#allocation22 + $0x90] ss:$8 sps:$4 sm:$0xff]  }
 0x450   :  { %1669 = vmatprep.subr.bf16.mxu1 %v3618_v1  ;;  %1926 = vmatprep.subr.bf16.mxu0 %v3678_v57  ;;  %v3690_v1 = vld [vmem:[#allocation22 + $0xa4] ss:$8 sps:$4 sm:$0xff]   ;;  %v3724_v56 = vld [vmem:[%s4768_s14 + $0x4] ss:$8 sps:$4 sm:$0xff]  }
 0x451   :  { %v3734_v57 = vld [vmem:[#allocation26] ss:$8 sps:$4 sm:$0xff]  }
 0x453   :  { %1670 = vmatpush1.bf16.msra.mxu1 %v3616_v2  ;;  %1927 = vmatpush1.bf16.msra.mxu0 %v3676_v58  ;;  %v3688_v2 = vld [vmem:[#allocation22 + $0xa0] ss:$8 sps:$4 sm:$0xff]  }
 0x454   :  { %1671 = vmatprep.subr.bf16.mxu1 %v3621_v3  ;;  %1928 = vmatprep.subr.bf16.mxu0 %v3681_v59  ;;  %v3693_v3 = vld [vmem:[#allocation22 + $0xb4] ss:$8 sps:$4 sm:$0xff]   ;;  %v3736_v58 = vld [vmem:[#allocation26 + $0x4] ss:$8 sps:$4 sm:$0xff]  }
 0x455   :  { %v1450_v8 = vpop.f32.mrb[8].mxu0  ;;  %v3739_v59 = vld [vmem:[#allocation26 + $0x14] ss:$8 sps:$4 sm:$0xff]  }
 0x456   :  { %v1452_v9 = vpop.f32.mrb[9].mxu0  ;;  %v1451_v40 = vadd.f32 %v1450_v8, %v1350_v37  ;;  %v3697_v8 = vld [vmem:[#allocation22 + $0xd0] ss:$8 sps:$4 sm:$0xff]  }
 0x457   :  { %1672 = vmatpush1.bf16.msra.mxu1 %v3619_v5  ;;  %v1453_v11 = vadd.f32 %v1452_v9, %v1354_v6  ;;  %v1454_v12 = vpop.f32.mrb[10].mxu0  ;;  %1929 = vmatpush1.bf16.msra.mxu0 %v3679_v60  ;;  %v3696_v5 = vld [vmem:[#allocation22 + $0xc4] ss:$8 sps:$4 sm:$0xff]   ;;  %v3694_v6 = vld [vmem:[#allocation22 + $0xc0] ss:$8 sps:$4 sm:$0xff]  }
 0x458   :  { %1673 = vmatprep.subr.bf16.mxu1 %v3624_v7  ;;  %v1455_v14 = vpop.f32.mrb[11].mxu0  ;;  %v1457_v43 = vmax.f32 %v1451_v40, 0.0  ;;  %1930 = vmatprep.subr.bf16.mxu0 %v3684_v61  ;;  %v3699_v7 = vld [vmem:[#allocation22 + $0xd4] ss:$8 sps:$4 sm:$0xff]   ;;  %v3702_v9 = vld [vmem:[#allocation22 + $0xe4] ss:$8 sps:$4 sm:$0xff]  }
 0x459   :  { %v1458_v15 = vmax.f32 %v1453_v11, 0.0  ;;  %v3705_v11 = vld [vmem:[#allocation22 + $0xf4] ss:$8 sps:$4 sm:$0xff]   ;;  %v3703_v12 = vld [vmem:[#allocation22 + $0xf0] ss:$8 sps:$4 sm:$0xff]   ;;  %v3707_v14 = vld [vmem:[#allocation25] sm:$0xff]  }
 0x45a   :  { %v1459_v44 = vpack.c.bf16 %v1457_v43, %v1457_v43  ;;  %v3737_v60 = vld [vmem:[#allocation26 + $0x10] ss:$8 sps:$4 sm:$0xff]   ;;  %v3742_v61 = vld [vmem:[#allocation26 + $0x24] ss:$8 sps:$4 sm:$0xff]  }
 0x45b   :  { %1674 = vmatpush1.bf16.msra.mxu1 %v3622_v10  ;;  %v1460_v17 = vpack.c.bf16 %v1458_v15, %v1458_v15  ;;  %1931 = vmatpush1.bf16.msra.mxu0 %v3682_v62  ;;  %v3700_v10 = vld [vmem:[#allocation22 + $0xe0] ss:$8 sps:$4 sm:$0xff]  }
 0x45c   :  { %1675 = vmatprep.subr.bf16.mxu1 %v3627_v13  ;;  %1932 = vmatprep.subr.bf16.mxu0 %v3687_v63  ;;  %v3706_v13 = vld [vmem:[#allocation25 + $0x40] sm:$0xff]   ;;  %v3708_v15 = vld [vmem:[#allocation25 + $0x48] sm:$0xff]   ;;  %v3745_v63 = vld [vmem:[#allocation26 + $0x34] ss:$8 sps:$4 sm:$0xff]  }
 0x45d   :  { %1697 = vmatprep.mubr.bf16.mxu1 %v1460_v17  ;;  %v3710_v17 = vld [vmem:[#allocation25 + $0x50] sm:$0xff]   ;;  %v3740_v62 = vld [vmem:[#allocation26 + $0x20] ss:$8 sps:$4 sm:$0xff]  }
 0x45f   :  { %1676 = vmatpush1.bf16.msra.mxu1 %v3625_v16  ;;  %1933 = vmatpush1.bf16.msra.mxu0 %v3685_v0  ;;  %v3709_v16 = vld [vmem:[#allocation25 + $0x8] sm:$0xff]   ;;  %v3743_v0 = vld [vmem:[#allocation26 + $0x30] ss:$8 sps:$4 sm:$0xff]  }
 0x460   :  { %1677 = vmatprep.subr.bf16.mxu1 %v3630_v18  ;;  %1934 = vmatprep.subr.bf16.mxu0 %v3690_v1  ;;  %v3711_v18 = vld [vmem:[#allocation25 + $0x10] sm:$0xff]   ;;  %v3748_v1 = vld [vmem:[#allocation26 + $0x44] ss:$8 sps:$4 sm:$0xff]  }
 0x463   :  { %1678 = vmatpush1.bf16.msra.mxu1 %v3628_v19  ;;  %1935 = vmatpush1.bf16.msra.mxu0 %v3688_v2  ;;  %v3712_v19 = vld [vmem:[#allocation25 + $0x58] sm:$0xff]   ;;  %v3746_v2 = vld [vmem:[#allocation26 + $0x40] ss:$8 sps:$4 sm:$0xff]  }
 0x464   :  { %1679 = vmatprep.subr.bf16.mxu1 %v3633_v20  ;;  %1936 = vmatprep.subr.bf16.mxu0 %v3693_v3  ;;  %v3713_v20 = vld [vmem:[#allocation25 + $0x18] sm:$0xff]  }
 0x465   :  { %v3751_v3 = vld [vmem:[#allocation26 + $0x54] ss:$8 sps:$4 sm:$0xff]  }
 0x467   :  { %1680 = vmatpush1.bf16.msra.mxu1 %v3631_v21  ;;  %1937 = vmatpush1.bf16.msra.mxu0 %v3691_v4  ;;  %v3714_v21 = vld [vmem:[#allocation25 + $0x60] sm:$0xff]   ;;  %v3749_v4 = vld [vmem:[#allocation26 + $0x50] ss:$8 sps:$4 sm:$0xff]  }
 0x468   :  { %1681 = vmatprep.subr.bf16.mxu1 %v3636_v22  ;;  %1938 = vmatprep.subr.bf16.mxu0 %v3696_v5  ;;  %v3715_v22 = vld [vmem:[#allocation25 + $0x20] sm:$0xff]  }
 0x469   :  { %v3754_v5 = vld [vmem:[#allocation26 + $0x64] ss:$8 sps:$4 sm:$0xff]  }
 0x46b   :  { %1682 = vmatpush1.bf16.msra.mxu1 %v3634_v23  ;;  %1939 = vmatpush1.bf16.msra.mxu0 %v3694_v6  ;;  %v3716_v23 = vld [vmem:[#allocation25 + $0x68] sm:$0xff]  }
 0x46c   :  { %1683 = vmatprep.subr.bf16.mxu1 %v3639_v24  ;;  %1940 = vmatprep.subr.bf16.mxu0 %v3699_v7  ;;  %v3717_v24 = vld [vmem:[#allocation25 + $0x28] sm:$0xff]   ;;  %v3757_v7 = vld [vmem:[#allocation26 + $0x74] ss:$8 sps:$4 sm:$0xff]  }
 0x46d   :  { %v3752_v6 = vld [vmem:[#allocation26 + $0x60] ss:$8 sps:$4 sm:$0xff]  }
 0x46f   :  { %1684 = vmatpush1.bf16.msra.mxu1 %v3637_v25  ;;  %1941 = vmatpush1.bf16.msra.mxu0 %v3697_v8  ;;  %v1116_v25 = vld [vmem:[#allocation14] sm:$0x3]  ;;  %v3755_v8 = vld [vmem:[#allocation26 + $0x70] ss:$8 sps:$4 sm:$0xff]  }
 0x470   :  { %1685 = vmatprep.subr.bf16.mxu1 %v3642_v26  ;;  %1942 = vmatprep.subr.bf16.mxu0 %v3702_v9  ;;  %v1121_v26 = vrot.slane %v1116_v25, %v4689_v32  ;;  %v3760_v9 = vld [vmem:[#allocation26 + $0x84] ss:$8 sps:$4 sm:$0xff]  }
 0x473   :  { %1686 = vmatpush1.bf16.msra.mxu1 %v3640_v27  ;;  %1943 = vmatpush1.bf16.msra.mxu0 %v3700_v10  ;;  %v1125_v27 = vrot.slane %v1116_v25, %v4692_v34  ;;  %v3758_v10 = vld [vmem:[#allocation26 + $0x80] ss:$8 sps:$4 sm:$0xff]   ;;  %v3722_v25 = vld [vmem:[%s4768_s14] ss:$8 sps:$4 sm:$0xff]  }
 0x474   :  { %1687 = vmatprep.subr.bf16.mxu1 %v3645_v28  ;;  %1944 = vmatprep.subr.bf16.mxu0 %v3705_v11  ;;  %v3763_v11 = vld [vmem:[#allocation26 + $0x94] ss:$8 sps:$4 sm:$0xff]  }
 0x477   :  { %1688 = vmatpush1.bf16.msra.mxu1 %v3643_v29  ;;  %1945 = vmatpush1.bf16.msra.mxu0 %v3703_v12  ;;  %v3761_v12 = vld [vmem:[#allocation26 + $0x90] ss:$8 sps:$4 sm:$0xff]  }
 0x478   :  { %1689 = vmatprep.subr.bf16.mxu1 %v3648_v30  ;;  %2451 = vmatprep.subr.bf16.mxu0 %v3736_v58  ;;  %v3794_v58 = vld [vmem:[#allocation28 + $0x40] ss:$8 sps:$4 sm:$0xff]  }
 0x47b   :  { %1690 = vmatpush1.bf16.msra.mxu1 %v3646_v31 }
 0x47c   :  { %1691 = vmatprep.subr.bf16.mxu1 %v3651_v35 }
 0x47f   :  { %1692 = vmatpush1.bf16.msra.mxu1 %v3649_v36 }
 0x480   :  { %1693 = vmatprep.subr.bf16.mxu1 %v3654_v38 }
 0x483   :  { %1694 = vmatpush1.bf16.msra.mxu1 %v3652_v39  ;;  %v1493_v39 = vld [vmem:[#allocation20] sm:$0x3] }
 0x484   :  { %1695 = vmatprep.subr.bf16.mxu1 %v3657_v41  ;;  %v1498_v40 = vrot.slane %v1493_v39, %v4689_v32  ;;  %v1502_v41 = vrot.slane %v1493_v39, %v4692_v34  ;;  %v3764_v39 = vld [vmem:[#allocation26 + $0xa0] ss:$8 sps:$4 sm:$0xff]  }
 0x487   :  { %1696 = vmatpush1.bf16.msra.mxu1 %v3655_v42 }
 0x488   :  { %3311 = vmatprep.subr.bf16.mxu1 %v3706_v13  ;;  %v1742_v13 = vld [vmem:[#allocation23] sm:$0x3] }
 0x48a   :  { %1698 = vmatmul.mubr.bf16.vlgmr.msra.gmra.mrb[8].mxu1 %v1459_v44 }
 0x48b   :  { %3312 = vmatpush3.bf16.msra.mxu1 %v3707_v14  ;;  %v1747_v14 = vrot.slane %v1742_v13, %v4689_v32 }
 0x48c   :  { %3313 = vmatprep.subr.bf16.mxu1 %v3708_v15  ;;  %v1751_v15 = vrot.slane %v1742_v13, %v4692_v34 }
 0x48f   :  { %3314 = vmatpush3.bf16.msra.mxu1 %v3709_v16 }
 0x490   :  { %3315 = vmatprep.subr.bf16.mxu1 %v3710_v17 }
 0x493   :  { %3316 = vmatpush3.bf16.msra.mxu1 %v3711_v18 }
 0x494   :  { %3317 = vmatprep.subr.bf16.mxu1 %v3712_v19 }
 0x497   :  { %3318 = vmatpush3.bf16.msra.mxu1 %v3713_v20 }
 0x498   :  { %3319 = vmatprep.subr.bf16.mxu1 %v3714_v21 }
 0x49b   :  { %3320 = vmatpush3.bf16.msra.mxu1 %v3715_v22 }
 0x49c   :  { %3321 = vmatprep.subr.bf16.mxu1 %v3716_v23 }
 0x49f   :  { %3322 = vmatpush3.bf16.msra.mxu1 %v3717_v24 }
 0x4a0   :  { %3323 = vmatprep.subr.bf16.mxu1 %v3718_v52  ;;  %v3785_v52 = vld [vmem:[#allocation28 + $0x10] ss:$8 sps:$4 sm:$0xff]  }
 0x4a3   :  { %3324 = vmatpush3.bf16.msra.mxu1 %v3719_v53  ;;  %v3790_v53 = vld [vmem:[#allocation28 + $0x24] ss:$8 sps:$4 sm:$0xff]  }
 0x4a4   :  { %3325 = vmatprep.subr.bf16.mxu1 %v3720_v54  ;;  %v3788_v54 = vld [vmem:[#allocation28 + $0x20] ss:$8 sps:$4 sm:$0xff]  }
 0x4a7   :  { %3326 = vmatpush3.bf16.msra.mxu1 %v3721_v55  ;;  %v3793_v55 = vld [vmem:[#allocation28 + $0x34] ss:$8 sps:$4 sm:$0xff]  }
 0x4a8   :  { %2202 = vmatprep.subr.bf16.mxu1 %v3724_v56  ;;  %v3791_v56 = vld [vmem:[#allocation28 + $0x30] ss:$8 sps:$4 sm:$0xff]  }
 0x51d   :  { %v1322_v28 = vpop.f32.mrb[4].mxu1 }
 0x51e   :  { %v1323_v29 = vadd.f32 %v1322_v28, %v1121_v26  ;;  %v1324_v30 = vpop.f32.mrb[5].mxu1  ;;  %v3725_v28 = vld [vmem:[%s4768_s14 + $0x10] ss:$8 sps:$4 sm:$0xff]  }
 0x51f   :  { %v1325_v31 = vadd.f32 %v1324_v30, %v1125_v27  ;;  %v1326_v35 = vpop.f32.mrb[6].mxu1  ;;  %v3727_v27 = vld [vmem:[%s4768_s14 + $0x14] ss:$8 sps:$4 sm:$0xff]   ;;  %v3728_v30 = vld [vmem:[%s4768_s14 + $0x20] ss:$8 sps:$4 sm:$0xff]  }
 0x520   :  { %v1329_v36 = vmax.f32 %v1323_v29, 0.0  ;;  %v1327_v37 = vpop.f32.mrb[7].mxu1  ;;  %v3730_v29 = vld [vmem:[%s4768_s14 + $0x24] ss:$8 sps:$4 sm:$0xff]   ;;  %v3731_v35 = vld [vmem:[%s4768_s14 + $0x30] ss:$8 sps:$4 sm:$0xff]  }
 0x521   :  { %v1330_v38 = vmax.f32 %v1325_v31, 0.0  ;;  %v3733_v31 = vld [vmem:[%s4768_s14 + $0x34] ss:$8 sps:$4 sm:$0xff]  }
 0x522   :  { %1331 = vst [vmem:[#allocation31] sm:$0xff] %v1329_v36  ;;  %v2136_v36 = vld [vmem:[#allocation7] sm:$0xff] }
 0x523   :  { %1332 = vst [vmem:[#allocation31 + $0x8] sm:$0xff] %v1330_v38  ;;  %v2137_v37 = vpack.c.bf16 %v2136_v36, %v2136_v36  ;;  %v3766_v38 = vld [vmem:[#allocation26 + $0xa4] ss:$8 sps:$4 sm:$0xff]  }
 0x55d   :  { %v1699_v42 = vpop.f32.mrb[8].mxu1 }
 0x55e   :  { %v1700_v43 = vadd.f32 %v1699_v42, %v1498_v40  ;;  %v1701_v44 = vpop.f32.mrb[9].mxu1  ;;  %v3769_v40 = vld [vmem:[#allocation26 + $0xb4] ss:$8 sps:$4 sm:$0xff]   ;;  %v3770_v42 = vld [vmem:[#allocation26 + $0xc0] ss:$8 sps:$4 sm:$0xff]  }
 0x55f   :  { %v1702_v45 = vadd.f32 %v1701_v44, %v1502_v41  ;;  %v1703_v46 = vpop.f32.mrb[10].mxu1  ;;  %v3772_v41 = vld [vmem:[#allocation26 + $0xc4] ss:$8 sps:$4 sm:$0xff]   ;;  %v3773_v44 = vld [vmem:[#allocation26 + $0xd0] ss:$8 sps:$4 sm:$0xff]  }
 0x560   :  { %v1706_v47 = vmax.f32 %v1700_v43, 0.0  ;;  %v1704_v48 = vpop.f32.mrb[11].mxu1  ;;  %v3775_v43 = vld [vmem:[#allocation26 + $0xd4] ss:$8 sps:$4 sm:$0xff]   ;;  %v3776_v46 = vld [vmem:[#allocation26 + $0xe0] ss:$8 sps:$4 sm:$0xff]  }
 0x561   :  { %v1707_v49 = vmax.f32 %v1702_v45, 0.0  ;;  %v3778_v45 = vld [vmem:[#allocation26 + $0xe4] ss:$8 sps:$4 sm:$0xff]   ;;  %v3779_v48 = vld [vmem:[#allocation26 + $0xf0] ss:$8 sps:$4 sm:$0xff]  }
 0x562   :  { %v1708_v51 = vpack.c.bf16 %v1706_v47, %v1706_v47  ;;  %v3781_v47 = vld [vmem:[#allocation26 + $0xf4] ss:$8 sps:$4 sm:$0xff]  }
 0x563   :  { %v1709_v50 = vpack.c.bf16 %v1707_v49, %v1707_v49  ;;  %v3782_v49 = vld [vmem:[#allocation28] ss:$8 sps:$4 sm:$0xff]  }
 0x565   :  { %1946 = vmatprep.mubr.bf16.mxu0 %v1709_v50  ;;  %v3784_v50 = vld [vmem:[#allocation28 + $0x4] ss:$8 sps:$4 sm:$0xff]  }
 0x566   :  { %1947 = vmatmul.mubr.bf16.vlgmr.msra.gmra.mrb[12].mxu0 %v1708_v51  ;;  %v3787_v51 = vld [vmem:[#allocation28 + $0x14] ss:$8 sps:$4 sm:$0xff]  }
 0x567   :  { %2452 = vmatpush1.bf16.msra.mxu0 %v3734_v57  ;;  %v3796_v57 = vld [vmem:[#allocation28 + $0x44] ss:$8 sps:$4 sm:$0xff]  }
 0x568   :  { %2453 = vmatprep.subr.bf16.mxu0 %v3739_v59  ;;  %v3799_v59 = vld [vmem:[#allocation28 + $0x54] ss:$8 sps:$4 sm:$0xff]  }
 0x56b   :  { %2454 = vmatpush1.bf16.msra.mxu0 %v3737_v60  ;;  %v3797_v60 = vld [vmem:[#allocation28 + $0x50] ss:$8 sps:$4 sm:$0xff]  }
 0x56c   :  { %2455 = vmatprep.subr.bf16.mxu0 %v3742_v61  ;;  %v3802_v61 = vld [vmem:[#allocation28 + $0x64] ss:$8 sps:$4 sm:$0xff]  }
 0x56f   :  { %2456 = vmatpush1.bf16.msra.mxu0 %v3740_v62  ;;  %v3800_v62 = vld [vmem:[#allocation28 + $0x60] ss:$8 sps:$4 sm:$0xff]  }
 0x570   :  { %2457 = vmatprep.subr.bf16.mxu0 %v3745_v63  ;;  %v3805_v63 = vld [vmem:[#allocation28 + $0x74] ss:$8 sps:$4 sm:$0xff]  }
 0x573   :  { %2458 = vmatpush1.bf16.msra.mxu0 %v3743_v0  ;;  %v3803_v0 = vld [vmem:[#allocation28 + $0x70] ss:$8 sps:$4 sm:$0xff]  }
 0x574   :  { %2459 = vmatprep.subr.bf16.mxu0 %v3748_v1  ;;  %v3808_v1 = vld [vmem:[#allocation28 + $0x84] ss:$8 sps:$4 sm:$0xff]  }
 0x577   :  { %2460 = vmatpush1.bf16.msra.mxu0 %v3746_v2  ;;  %v3806_v2 = vld [vmem:[#allocation28 + $0x80] ss:$8 sps:$4 sm:$0xff]  }
 0x578   :  { %2461 = vmatprep.subr.bf16.mxu0 %v3751_v3  ;;  %v3811_v3 = vld [vmem:[#allocation28 + $0x94] ss:$8 sps:$4 sm:$0xff]  }
 0x57b   :  { %2462 = vmatpush1.bf16.msra.mxu0 %v3749_v4  ;;  %v3809_v4 = vld [vmem:[#allocation28 + $0x90] ss:$8 sps:$4 sm:$0xff]  }
 0x57c   :  { %2463 = vmatprep.subr.bf16.mxu0 %v3754_v5  ;;  %v3814_v5 = vld [vmem:[#allocation28 + $0xa4] ss:$8 sps:$4 sm:$0xff]  }
 0x57f   :  { %2464 = vmatpush1.bf16.msra.mxu0 %v3752_v6  ;;  %v3812_v6 = vld [vmem:[#allocation28 + $0xa0] ss:$8 sps:$4 sm:$0xff]  }
 0x580   :  { %2465 = vmatprep.subr.bf16.mxu0 %v3757_v7  ;;  %v3817_v7 = vld [vmem:[#allocation28 + $0xb4] ss:$8 sps:$4 sm:$0xff]  }
 0x583   :  { %2466 = vmatpush1.bf16.msra.mxu0 %v3755_v8  ;;  %v3815_v8 = vld [vmem:[#allocation28 + $0xb0] ss:$8 sps:$4 sm:$0xff]  }
 0x584   :  { %2467 = vmatprep.subr.bf16.mxu0 %v3760_v9  ;;  %v3820_v9 = vld [vmem:[#allocation28 + $0xc4] ss:$8 sps:$4 sm:$0xff]  }
 0x587   :  { %2468 = vmatpush1.bf16.msra.mxu0 %v3758_v10  ;;  %v3818_v10 = vld [vmem:[#allocation28 + $0xc0] ss:$8 sps:$4 sm:$0xff]  }
 0x588   :  { %2469 = vmatprep.subr.bf16.mxu0 %v3763_v11  ;;  %v3823_v11 = vld [vmem:[#allocation28 + $0xd4] ss:$8 sps:$4 sm:$0xff]  }
 0x58b   :  { %2470 = vmatpush1.bf16.msra.mxu0 %v3761_v12  ;;  %v3821_v12 = vld [vmem:[#allocation28 + $0xd0] ss:$8 sps:$4 sm:$0xff]  }
 0x58c   :  { %2471 = vmatprep.subr.bf16.mxu0 %v3766_v38  ;;  %v3824_v38 = vld [vmem:[#allocation28 + $0xe0] ss:$8 sps:$4 sm:$0xff]  }
 0x58f   :  { %2472 = vmatpush1.bf16.msra.mxu0 %v3764_v39  ;;  %v3829_v39 = vld [vmem:[#allocation28 + $0xf4] ss:$8 sps:$4 sm:$0xff]  }
 0x590   :  { %2473 = vmatprep.subr.bf16.mxu0 %v3769_v40  ;;  %v3827_v40 = vld [vmem:[#allocation28 + $0xf0] ss:$8 sps:$4 sm:$0xff]  }
 0x639   :  { %v1948_v16 = vpop.f32.mrb[12].mxu0 }
 0x63a   :  { %v1949_v17 = vadd.f32 %v1948_v16, %v1747_v14  ;;  %v1950_v18 = vpop.f32.mrb[13].mxu0  ;;  %v3204_v14 = vld [vmem:[%s4769_s27] ss:$0 sm:$0xff] }
 0x63b   :  { %v1951_v19 = vadd.f32 %v1950_v18, %v1751_v15  ;;  %v1952_v20 = vpop.f32.mrb[14].mxu0 }
 0x63c   :  { %v1955_v21 = vmax.f32 %v1949_v17, 0.0  ;;  %v1953_v22 = vpop.f32.mrb[15].mxu0 }
 0x63d   :  { %v1956_v23 = vmax.f32 %v1951_v19, 0.0 }
 0x63e   :  { %v1957_v26 = vpack.c.bf16 %v1955_v21, %v1955_v21  ;;  %v2146_v21 = vld [vmem:[%s4770_s24] sm:$0x3] }
 0x63f   :  { %v1958_v24 = vpack.c.bf16 %v1956_v23, %v1956_v23  ;;  %v2151_v22 = vrot.slane %v2146_v21, %v4689_v32  ;;  %v2155_v23 = vrot.slane %v2146_v21, %v4692_v34 }
 0x641   :  { %2126 = vmatprep.mubr.bf16.mxu1 %v1958_v24 }
 0x642   :  { %2127 = vmatmul.mubr.bf16.vlgmr.msra.gmra.mrb[12].mxu1 %v1957_v26 }
 0x643   :  { %2203 = vmatpush1.bf16.msra.mxu1 %v3722_v25  ;;  %2234 = vmatprep.mubr.bf16.mxu1 %v4383_v33  ;;  %v3767_v33 = vld [vmem:[#allocation26 + $0xb0] ss:$8 sps:$4 sm:$0xff]  }
 0x644   :  { %2204 = vmatprep.subr.bf16.mxu1 %v3727_v27  ;;  %2474 = vmatpush1.bf16.msra.mxu0 %v3767_v33  ;;  %v3830_v33 = vld [vmem:[#allocation29 + $0x40] sm:$0xff]  }
 0x645   :  { %2475 = vmatprep.subr.bf16.mxu0 %v3772_v41  ;;  %v3831_v41 = vld [vmem:[#allocation29] sm:$0xff]  }
 0x647   :  { %2205 = vmatpush1.bf16.msra.mxu1 %v3725_v28 }
 0x648   :  { %2206 = vmatprep.subr.bf16.mxu1 %v3730_v29  ;;  %2476 = vmatpush1.bf16.msra.mxu0 %v3770_v42  ;;  %v3832_v42 = vld [vmem:[#allocation29 + $0x48] sm:$0xff]  }
 0x649   :  { %2477 = vmatprep.subr.bf16.mxu0 %v3775_v43  ;;  %v3833_v43 = vld [vmem:[#allocation29 + $0x8] sm:$0xff]  }
 0x64b   :  { %2207 = vmatpush1.bf16.msra.mxu1 %v3728_v30 }
 0x64c   :  { %2208 = vmatprep.subr.bf16.mxu1 %v3733_v31  ;;  %2478 = vmatpush1.bf16.msra.mxu0 %v3773_v44  ;;  %v3834_v44 = vld [vmem:[#allocation29 + $0x50] sm:$0xff]  }
 0x64d   :  { %2479 = vmatprep.subr.bf16.mxu0 %v3778_v45  ;;  %v3835_v45 = vld [vmem:[#allocation29 + $0x10] sm:$0xff]  }
 0x64f   :  { %2209 = vmatpush1.bf16.msra.mxu1 %v3731_v35 }
 0x650   :  { %2480 = vmatpush1.bf16.msra.mxu0 %v3776_v46  ;;  %2700 = vmatprep.subr.bf16.mxu1 %v3784_v50  ;;  %v3836_v46 = vld [vmem:[#allocation29 + $0x58] sm:$0xff]   ;;  %v3840_v50 = vld [vmem:[#allocation29 + $0x68] sm:$0xff]  }
 0x651   :  { %2481 = vmatprep.subr.bf16.mxu0 %v3781_v47  ;;  %v3837_v47 = vld [vmem:[#allocation29 + $0x18] sm:$0xff]  }
 0x652   :  { %3229 = vmatmul.mubr.msk.bf16.vlgmr.msra.gmra.mrb[16].mxu1 %vm2198_vm4, %v2137_v37  ;;  %v3826_v37 = vld [vmem:[#allocation28 + $0xe4] ss:$8 sps:$4 sm:$0xff]  }
 0x653   :  { %2701 = vmatpush1.bf16.msra.mxu1 %v3782_v49  ;;  %v3839_v49 = vld [vmem:[#allocation29 + $0x20] sm:$0xff]  }
 0x654   :  { %2482 = vmatpush1.bf16.msra.mxu0 %v3779_v48  ;;  %2702 = vmatprep.subr.bf16.mxu1 %v3787_v51  ;;  %v3838_v48 = vld [vmem:[#allocation29 + $0x60] sm:$0xff]   ;;  %v3841_v51 = vld [vmem:[#allocation29 + $0x28] sm:$0xff]  }
 0x655   :  { %3333 = vmatprep.subr.bf16.mxu0 %v3830_v33 }
 0x657   :  { %2703 = vmatpush1.bf16.msra.mxu1 %v3785_v52  ;;  %v2279_v52 = vld [vmem:[%s4771_s11] sm:$0x3] }
 0x658   :  { %2704 = vmatprep.subr.bf16.mxu1 %v3790_v53  ;;  %v2284_v53 = vrot.slane %v2279_v52, %v4689_v32 }
 0x65b   :  { %2705 = vmatpush1.bf16.msra.mxu1 %v3788_v54  ;;  %v2288_v54 = vrot.slane %v2279_v52, %v4692_v34 }
 0x65c   :  { %2706 = vmatprep.subr.bf16.mxu1 %v3793_v55 }
 0x65f   :  { %2707 = vmatpush1.bf16.msra.mxu1 %v3791_v56 }
 0x660   :  { %2708 = vmatprep.subr.bf16.mxu1 %v3796_v57 }
 0x663   :  { %2709 = vmatpush1.bf16.msra.mxu1 %v3794_v58 }
 0x664   :  { %2710 = vmatprep.subr.bf16.mxu1 %v3799_v59 }
 0x667   :  { %2711 = vmatpush1.bf16.msra.mxu1 %v3797_v60 }
 0x668   :  { %2712 = vmatprep.subr.bf16.mxu1 %v3802_v61 }
 0x66b   :  { %2713 = vmatpush1.bf16.msra.mxu1 %v3800_v62 }
 0x66c   :  { %2714 = vmatprep.subr.bf16.mxu1 %v3805_v63 }
 0x66f   :  { %2715 = vmatpush1.bf16.msra.mxu1 %v3803_v0 }
 0x670   :  { %2716 = vmatprep.subr.bf16.mxu1 %v3808_v1  ;;  %v3842_v1 = vld [vmem:[#allocation29 + $0x70] sm:$0xff]  }
 0x673   :  { %2717 = vmatpush1.bf16.msra.mxu1 %v3806_v2  ;;  %v3843_v2 = vld [vmem:[#allocation29 + $0x30] sm:$0xff]  }
 0x674   :  { %2718 = vmatprep.subr.bf16.mxu1 %v3811_v3  ;;  %v3844_v3 = vld [vmem:[#allocation29 + $0x78] sm:$0xff]  }
 0x677   :  { %2719 = vmatpush1.bf16.msra.mxu1 %v3809_v4  ;;  %v3845_v4 = vld [vmem:[#allocation29 + $0x38] sm:$0xff]  }
 0x678   :  { %2720 = vmatprep.subr.bf16.mxu1 %v3814_v5  ;;  %v2528_v5 = vld [vmem:[%s4772_s0] sm:$0x3] }
 0x67b   :  { %2721 = vmatpush1.bf16.msra.mxu1 %v3812_v6  ;;  %v2533_v6 = vrot.slane %v2528_v5, %v4689_v32 }
 0x67c   :  { %2722 = vmatprep.subr.bf16.mxu1 %v3817_v7  ;;  %v2537_v7 = vrot.slane %v2528_v5, %v4692_v34 }
 0x67f   :  { %2723 = vmatpush1.bf16.msra.mxu1 %v3815_v8 }
 0x680   :  { %2724 = vmatprep.subr.bf16.mxu1 %v3820_v9 }
 0x683   :  { %2725 = vmatpush1.bf16.msra.mxu1 %v3818_v10 }
 0x684   :  { %2726 = vmatprep.subr.bf16.mxu1 %v3823_v11 }
 0x687   :  { %2727 = vmatpush1.bf16.msra.mxu1 %v3821_v12 }
 0x688   :  { %2728 = vmatprep.subr.bf16.mxu1 %v3826_v37 }
 0x68b   :  { %2729 = vmatpush1.bf16.msra.mxu1 %v3824_v38 }
 0x68c   :  { %2730 = vmatprep.subr.bf16.mxu1 %v3829_v39 }
 0x68f   :  { %2731 = vmatpush1.bf16.msra.mxu1 %v3827_v40 }
 0x715   :  { %v3327_v13 = vpop.f32.mrb[12].mxu1 }
 0x716   :  { %v3328_v15 = vpop.f32.mrb[13].mxu1 }
 0x717   :  { %v3329_v16 = vadd.f32 %v3328_v15, %v3327_v13  ;;  %v3330_v17 = vpop.f32.mrb[14].mxu1 }
 0x718   :  { %v3331_v18 = vpop.f32.mrb[15].mxu1 }
 0x719   :  { %v2129_v19 = vadd.f32 %v3329_v16, %v3204_v14 }
 0x71b   :  { %v2134_v20 = vmax.f32 %v2129_v19, 0.0 }
 0x71d   :  { %2135 = vst [vmem:[#allocation32] sm:$0xff] %v2134_v20 }
 0x725   :  { %v2236_v24 = vpop.f32.mrb[16].mxu1 }
 0x726   :  { %v2237_v25 = vadd.f32 %v2236_v24, %v2151_v22  ;;  %v2238_v26 = vpop.f32.mrb[17].mxu1 }
 0x727   :  { %v2239_v27 = vadd.f32 %v2238_v26, %v2155_v23  ;;  %v2240_v28 = vpop.f32.mrb[18].mxu1 }
 0x728   :  { %v2243_v29 = vmax.f32 %v2237_v25, 0.0  ;;  %v2241_v30 = vpop.f32.mrb[19].mxu1 }
 0x729   :  { %v2244_v31 = vmax.f32 %v2239_v27, 0.0 }
 0x72a   :  { %v2245_v36 = vpack.c.bf16 %v2243_v29, %v2243_v29 }
 0x72b   :  { %v2246_v35 = vpack.c.bf16 %v2244_v31, %v2244_v31 }
 0x72d   :  { %2483 = vmatprep.mubr.bf16.mxu0 %v2246_v35 }
 0x72e   :  { %2484 = vmatmul.mubr.bf16.vlgmr.msra.gmra.mrb[16].mxu0 %v2245_v36 }
 0x72f   :  { %3334 = vmatpush3.bf16.msra.mxu0 %v3831_v41 }
 0x730   :  { %3335 = vmatprep.subr.bf16.mxu0 %v3832_v42 }
 0x733   :  { %3336 = vmatpush3.bf16.msra.mxu0 %v3833_v43 }
 0x734   :  { %3337 = vmatprep.subr.bf16.mxu0 %v3834_v44 }
 0x737   :  { %3338 = vmatpush3.bf16.msra.mxu0 %v3835_v45 }
 0x738   :  { %3339 = vmatprep.subr.bf16.mxu0 %v3836_v46 }
 0x73b   :  { %3340 = vmatpush3.bf16.msra.mxu0 %v3837_v47 }
 0x73c   :  { %3341 = vmatprep.subr.bf16.mxu0 %v3838_v48 }
 0x73f   :  { %3342 = vmatpush3.bf16.msra.mxu0 %v3839_v49 }
 0x740   :  { %3343 = vmatprep.subr.bf16.mxu0 %v3840_v50 }
 0x743   :  { %3344 = vmatpush3.bf16.msra.mxu0 %v3841_v51 }
 0x744   :  { %3345 = vmatprep.subr.bf16.mxu0 %v3842_v1 }
 0x747   :  { %3346 = vmatpush3.bf16.msra.mxu0 %v3843_v2 }
 0x748   :  { %3347 = vmatprep.subr.bf16.mxu0 %v3844_v3 }
 0x74b   :  { %3348 = vmatpush3.bf16.msra.mxu0 %v3845_v4 }
 0x801   :  { %v2485_v55 = vpop.f32.mrb[16].mxu0 }
 0x802   :  { %v2486_v56 = vadd.f32 %v2485_v55, %v2284_v53  ;;  %v2487_v57 = vpop.f32.mrb[17].mxu0 }
 0x803   :  { %v2488_v58 = vadd.f32 %v2487_v57, %v2288_v54  ;;  %v2489_v59 = vpop.f32.mrb[18].mxu0 }
 0x804   :  { %v2492_v60 = vmax.f32 %v2486_v56, 0.0  ;;  %v2490_v61 = vpop.f32.mrb[19].mxu0 }
 0x805   :  { %v2493_v62 = vmax.f32 %v2488_v58, 0.0 }
 0x806   :  { %v2494_v0 = vpack.c.bf16 %v2492_v60, %v2492_v60 }
 0x807   :  { %v2495_v63 = vpack.c.bf16 %v2493_v62, %v2493_v62 }
 0x809   :  { %2732 = vmatprep.mubr.bf16.mxu1 %v2495_v63 }
 0x80a   :  { %2733 = vmatmul.mubr.bf16.vlgmr.msra.gmra.mrb[20].mxu1 %v2494_v0 }
 0x8dd   :  { %v2734_v8 = vpop.f32.mrb[20].mxu1 }
 0x8de   :  { %v2735_v9 = vadd.f32 %v2734_v8, %v2533_v6  ;;  %v2736_v10 = vpop.f32.mrb[21].mxu1 }
 0x8df   :  { %v2737_v11 = vadd.f32 %v2736_v10, %v2537_v7  ;;  %v2738_v12 = vpop.f32.mrb[22].mxu1 }
 0x8e0   :  { %v2741_v13 = vmax.f32 %v2735_v9, 0.0  ;;  %v2739_v14 = vpop.f32.mrb[23].mxu1 }
 0x8e1   :  { %v2742_v15 = vmax.f32 %v2737_v11, 0.0 }
 0x8e2   :  { %v2743_v17 = vpack.c.bf16 %v2741_v13, %v2741_v13 }
 0x8e3   :  { %v2744_v16 = vpack.c.bf16 %v2742_v15, %v2742_v15 }
 0x8e5   :  { %2912 = vmatprep.mubr.bf16.mxu0 %v2744_v16 }
 0x8e6   :  { %2913 = vmatmul.mubr.bf16.vlgmr.msra.gmra.mrb[20].mxu0 %v2743_v17 }
 0x8e7   :  { %4253 = shalt.err (!%p4250_p8)
}
 0x8e8   :  { %s4254_s18 = scalar_lea.hbm %s4535_s21, 128 }
 0x8e9   :  { %p4255_p9 = scmp.ne.s32.totalorder %s4535_s21, %s4254_s18  ;;  %p4258_p10 = scmp.lt.u32.totalorder %s4254_s18, %s4535_s21 }
 0x8eb   :  { %p4260_p11 = pnand %p4258_p10, %p4255_p9 }
 0x8ed   :  { %4263 = shalt.err (!%p4260_p11)
}
 0x8ee   :  { %2941 = dma.vmem_to_hbm [thread:$0]  %s2939_s3, 128, %s4535_s21, [#allocation33]  }
 0x8ef   :  { %s4264_s22 = scalar_lea.vmem %s2929_s4, 256  ;;  %p4269_p13 = scmp.lt.s32.totalorder %s2929_s4, %s2929_s4 }
 0x8f0   :  { %p4265_p12 = scmp.ne.s32.totalorder %s2929_s4, %s4264_s22  ;;  %p4270_p0 = scmp.lt.s32.totalorder %s4264_s22, %s4264_s22 }
 0x8f2   :  { %p4271_p1 = por %p4270_p0, %p4269_p13 }
 0x8f4   :  { %p4272_p2 = pnand %p4271_p1, %p4265_p12 }
 0x8f6   :  { %4275 = shalt.err (!%p4272_p2)
}
 0x8f7   :  { %s4276_s19 = scalar_lea.hbm %s4530_s29, 256 }
 0x8f8   :  { %p4277_p3 = scmp.ne.s32.totalorder %s4530_s29, %s4276_s19  ;;  %p4280_p4 = scmp.lt.u32.totalorder %s4276_s19, %s4530_s29 }
 0x8fa   :  { %p4282_p5 = pnand %p4280_p4, %p4277_p3 }
 0x8fc   :  { %4285 = shalt.err (!%p4282_p5)
}
 0x8fd   :  { %2931 = dma.vmem_to_hbm [thread:$0]  %s2929_s4, 256, %s4530_s29, [#allocation4]   ;;  %v3294_v34 = vld [vmem:[%s4525_s8] ss:$0 sm:$0xff] }
 0x8fe   :  { %s4386_s21 = smov [#allocation34]  }
 0x8ff   :  { %s2948_s5 = sshll.u32 %s4386_s21, 4  ;;  %s2949_s5 = int_to_ptr.vmem [resolvable:$true] %s2948_s5 }
 0x900   :  { %s4286_s26 = scalar_lea.vmem %s2949_s5, 128  ;;  %p4291_p7 = scmp.lt.s32.totalorder %s2949_s5, %s2949_s5 }
 0x901   :  { %p4287_p6 = scmp.ne.s32.totalorder %s2949_s5, %s4286_s26  ;;  %p4292_p8 = scmp.lt.s32.totalorder %s4286_s26, %s4286_s26 }
 0x903   :  { %p4293_p9 = por %p4292_p8, %p4291_p7 }
 0x905   :  { %p4294_p10 = pnand %p4293_p9, %p4287_p6 }
 0x9b9   :  { %v3349_v32 = vpop.f32.mrb[20].mxu0 }
 0x9ba   :  { %v3350_v18 = vpop.f32.mrb[21].mxu0 }
 0x9bb   :  { %v3351_v19 = vadd.f32 %v3350_v18, %v3349_v32  ;;  %v3352_v20 = vpop.f32.mrb[22].mxu0 }
 0x9bc   :  { %v3353_v21 = vpop.f32.mrb[23].mxu0 }
 0x9bd   :  { %v2915_v22 = vadd.f32 %v3351_v19, %v3294_v34 }
 0x9bf   :  { %v2920_v23 = vmax.f32 %v2915_v22, 0.0 }
 0x9c1   :  { %2921 = vst [vmem:[#allocation34] sm:$0xff] %v2920_v23 }
 0x9c2   :  { %4297 = shalt.err (!%p4294_p10)
}
 0x9c3   :  { %s4298_s29 = scalar_lea.hbm %s4540_s20, 128 }
 0x9c4   :  { %p4299_p11 = scmp.ne.s32.totalorder %s4540_s20, %s4298_s29  ;;  %p4302_p12 = scmp.lt.u32.totalorder %s4298_s29, %s4540_s20 }
 0x9c6   :  { %p4304_p13 = pnand %p4302_p12, %p4299_p11 }
 0x9c8   :  { %4307 = shalt.err (!%p4304_p13)
}
 0x9c9   :  { %2951 = dma.vmem_to_hbm [thread:$0]  %s2949_s5, 128, %s4540_s20, [#allocation33]  }
 0x9ca   :  { %4328 = dma.done.wait [#allocation4], 256  }
 0x9cb   :  { %4329 = vsyncadd [#allocation4], 4294967040 }
 0x9cc   :  { %4330 = dma.done.wait [#allocation33], 256  }
 0x9cd   :  { %4331 = vsyncadd [#allocation33], 4294967040 }
 0x9ce   :  { %2961 = vsyncpa [#allocation3], 1 }
 0x9cf   :  { %2962 = vsyncpa [#allocation6], 1 }
 0x9d0   :  { %2963 = vsyncpa [#allocation9], 1 }
 0x9d1   :  { %2964 = vsyncpa [#allocation12], 1 }
 0x9d2   :  { %2965 = vsyncpa [#allocation15], 1 }
 0x9d3   :  { %2966 = vsyncpa [#allocation18], 1 }
 0x9d4   :  { %2967 = vsyncpa [#allocation21], 1 }
 0x9d5   :  { %2968 = vsyncpa [#allocation24], 1 }
 0x9d6   :  { %2969 = vsyncpa [#allocation27], 1 }
 0x9d7   :  { %2970 = vsyncpa [#allocation30], 1 }
 0x9d8   :  { %2971 = vsyncpa [#allocation4], 1 }
 0x9d9   :  { %2972 = vsyncpa [#allocation33], 1 }

</bundles_post_ra>
